<compile_context>
chip_gen: v7x
topology: tpu7x:2x2x1
jax: 0.10.0
libtpu: 0.0.40
codegen_flags: <defaults>
</compile_context>

<pallas_src>
import functools

import jax
import jax.numpy as jnp
from jax.experimental import pallas as pl
from jax.experimental.pallas import tpu as pltpu

INPUT_DIM = 128
HIDDEN_DIMS = [64, 32]
LATENT_DIM = 16
BN_EPS = 1e-5

PAD = 128                  # every activation / weight padded to 128 lanes
NUM_MATMULS = 5            # L1, L2, fused L3*L4, L5, L6
NUM_BN = 4                 # BN+ReLU follows matmuls 0..3
NUM_SWEEPS = NUM_BN + 1    # 4 stat sweeps + 1 output sweep


# --------------------------------------------------------------------------- #
# Kernel
# --------------------------------------------------------------------------- #
def _ae_kernel(x_ref, w_ref, vec_ref, out_ref,
               stage_ref, sum_ref, sq_ref, coef_ref,
               *, n_rows, tile_rows, needs_mask):
    s = pl.program_id(0)            # sweep index (slow axis)
    i = pl.program_id(1)            # batch-tile index (fast axis)
    inv_n = 1.0 / float(n_rows)     # true (unpadded) batch size

    # Zero the per-layer stat accumulators once, at the very first grid step.
    @pl.when((s == 0) & (i == 0))
    def _():
        sum_ref[...] = jnp.zeros_like(sum_ref)
        sq_ref[...] = jnp.zeros_like(sq_ref)

    def matmul(h_f32, layer):
        # Lane-dense (tile_rows,128)x(128,128) bf16 MXU matmul, f32 accumulate.
        return jnp.dot(h_f32.astype(w_ref.dtype), w_ref[layer],
                       preferred_element_type=jnp.float32)

    def fold_bn(layer):
        # Full-batch sum/sumsq for `layer` are final -> fold BN (and its
        # gamma/beta) into one scale/shift per lane.  Runs once per sweep.
        mean = sum_ref[layer:layer + 1, :] * inv_n
        var = jnp.maximum(sq_ref[layer:layer + 1, :] * inv_n - mean * mean, 0.0)
        scale = vec_ref[2 * layer:2 * layer + 1, :] * jax.lax.rsqrt(var + BN_EPS)
        coef_ref[0:1, :] = scale
        coef_ref[1:2, :] = vec_ref[2 * layer + 1:2 * layer + 2, :] - mean * scale

    def bn_relu(a_f32):
        return jnp.maximum(a_f32 * coef_ref[0:1, :] + coef_ref[1:2, :], 0.0)

    def accumulate(a, layer):
        # Padded rows (ragged last tile) must not contribute to the stats.
        if needs_mask:
            rows = jax.lax.broadcasted_iota(jnp.int32, (tile_rows, 1), 0)
            a = jnp.where(i * tile_rows + rows < n_rows, a, 0.0)
        sum_ref[layer:layer + 1, :] += jnp.sum(a, axis=0, keepdims=True)
        sq_ref[layer:layer + 1, :] += jnp.sum(a * a, axis=0, keepdims=True)

    # ---- sweep 0: stream x (the only sweep that touches x), first matmul. --
    @pl.when(s == 0)
    def _():
        a = matmul(x_ref[...], 0)
        accumulate(a, 0)
        stage_ref[i] = a.astype(stage_ref.dtype)

    # ---- sweeps 1..3: BN+ReLU(layer s-1) with final stats, next matmul. ----
    for k in range(1, NUM_BN):
        @pl.when(s == k)
        def _(k=k):
            @pl.when(i == 0)
            def _():
                fold_bn(k - 1)
            a = matmul(bn_relu(stage_ref[i].astype(jnp.float32)), k)
            accumulate(a, k)
            stage_ref[i] = a.astype(stage_ref.dtype)

    # ---- final sweep: BN+ReLU(layer 3), output matmul + bias, writeback. ---
    @pl.when(s == NUM_SWEEPS - 1)
    def _():
        @pl.when(i == 0)
        def _():
            fold_bn(NUM_BN - 1)
        y = matmul(bn_relu(stage_ref[i].astype(jnp.float32)), NUM_MATMULS - 1)
        out_ref[...] = (y + vec_ref[2 * NUM_BN:2 * NUM_BN + 1, :]).astype(out_ref.dtype)


# --------------------------------------------------------------------------- #
# Wrapper
# --------------------------------------------------------------------------- #
def _round_up(v, m):
    return (v + m - 1) // m * m


@functools.partial(jax.jit, static_argnames=("tile_n",))
def batchnorm_autoencoder_forward(x, w_slab, vec_slab, *, tile_n=2048):
    n, d = x.shape
    assert d == INPUT_DIM == PAD, "input feature dim must be 128"
    assert n >= 2, "training-mode BatchNorm1d needs a batch of at least 2 rows"

    # Large batch tiles amortize the ~0.35us/grid-step overhead; ragged
    # batches are zero-padded to a tile multiple (padded rows are masked out
    # of the BN statistics inside the kernel and sliced off on return).
    tile_rows = max(16, min(_round_up(tile_n, 16), _round_up(n, 16)))
    num_tiles = -(-n // tile_rows)
    n_pad = num_tiles * tile_rows
    needs_mask = (n_pad != n)
    if needs_mask:
        x = jnp.pad(x, ((0, n_pad - n), (0, 0)))

    # VMEM budget: staged pre-activations (bf16, whole padded batch) dominate.
    itemsize_w = jnp.dtype(w_slab.dtype).itemsize
    stage_bytes = n_pad * PAD * itemsize_w
    pipe_bytes = 2 * 2 * tile_rows * PAD * 4            # x + out tiles, f32, 2-buf
    fixed_bytes = 2 * (w_slab.size * itemsize_w + vec_slab.size * 4) \
        + (2 * NUM_BN + 2) * PAD * 4
    needed = stage_bytes + pipe_bytes + fixed_bytes
    try:
        vmem_cap = int(pltpu.get_tpu_info().vmem_capacity_bytes)
    except Exception:
        vmem_cap = 64 * 1024 * 1024                      # conservative (v7x)
    budget = vmem_cap - 8 * 1024 * 1024
    if needed > budget:
        # TODO(synk): HBM staging of pre-activations for very large batches.
        raise ValueError(
            f"batch of {n} rows needs ~{needed >> 20} MiB of VMEM staging; "
            f"budget is {budget >> 20} MiB")
    vmem_limit = int(min(budget, max(32 * 1024 * 1024, needed + 4 * 1024 * 1024)))

    kernel = functools.partial(_ae_kernel, n_rows=n, tile_rows=tile_rows,
                               needs_mask=needs_mask)
    last = NUM_SWEEPS - 1

    out_pad = pl.pallas_call(
        kernel,
        out_shape=jax.ShapeDtypeStruct((n_pad, PAD), jnp.float32),
        grid_spec=pltpu.PrefetchScalarGridSpec(
            num_scalar_prefetch=0,
            grid=(NUM_SWEEPS, num_tiles),
            in_specs=[
                # x is only consumed on sweep 0 -> pin its block to 0 on later
                # sweeps so it is streamed from HBM exactly once.
                pl.BlockSpec((tile_rows, PAD),
                             lambda s, i: (jnp.where(s == 0, i, 0), 0)),
                # All five 128x128-padded weights in one slab, DMA'd once.
                pl.BlockSpec((NUM_MATMULS, PAD, PAD), lambda s, i: (0, 0, 0)),
                # gamma/beta for the 4 BN layers + final bias, one slab.
                pl.BlockSpec((2 * NUM_BN + 1, PAD), lambda s, i: (0, 0)),
            ],
            # Output is produced only on the last sweep; on earlier sweeps the
            # block index is pinned to 0, so each output tile is written to
            # HBM exactly once.  (Any early flush of block 0's buffer is
            # overwritten by the final-sweep write, which is the last flush of
            # that region — correct under Pallas' writeback-on-index-change.)
            out_specs=pl.BlockSpec(
                (tile_rows, PAD), lambda s, i: (jnp.where(s == last, i, 0), 0)),
            scratch_shapes=[
                pltpu.VMEM((num_tiles, tile_rows, PAD), w_slab.dtype),  # staged pre-acts
                pltpu.VMEM((NUM_BN, PAD), jnp.float32),                 # per-layer sum
                pltpu.VMEM((NUM_BN, PAD), jnp.float32),                 # per-layer sum sq
                pltpu.VMEM((2, PAD), jnp.float32),                      # folded scale/shift
            ],
        ),
        compiler_params=pltpu.CompilerParams(
            # Both axes are sequential: BN stats accumulate across batch tiles
            # and each sweep consumes the previous sweep's staged activations.
            dimension_semantics=("arbitrary", "arbitrary"),
            vmem_limit_bytes=vmem_limit,
        ),
        cost_estimate=pl.CostEstimate(
            flops=2 * n_pad * PAD * PAD * NUM_MATMULS,
            transcendentals=NUM_BN * PAD,
            bytes_accessed=(2 * n_pad * PAD * 4
                            + w_slab.size * itemsize_w + vec_slab.size * 4)),
    )(x, w_slab, vec_slab)

    return out_pad[:n] if needs_mask else out_pad


# --------------------------------------------------------------------------- #
# Parameter construction / packing
# --------------------------------------------------------------------------- #
def _init_linear(key, in_dim, out_dim):
    """PyTorch nn.Linear init: U(-1/sqrt(in), 1/sqrt(in)); weight as (in,out)."""
    kw, kb = jax.random.split(key)
    bound = 1.0 / float(in_dim) ** 0.5
    w = jax.random.uniform(kw, (in_dim, out_dim), jnp.float32, -bound, bound)
    b = jax.random.uniform(kb, (out_dim,), jnp.float32, -bound, bound)
    return w, b


def init_params(key):
    """Deterministic parameters in PyTorch layer order (weights as (in,out)).

    BN gamma/beta are randomized (instead of PyTorch's 1/0 init) so the
    numerical check actually exercises the affine part of BatchNorm.
    """
    dims_enc = [INPUT_DIM] + HIDDEN_DIMS          # [128, 64, 32]
    dims_dec = [LATENT_DIM] + HIDDEN_DIMS[::-1]   # [16, 32, 64]
    keys = jax.random.split(key, 10)
    params = []

    def bn_params(k, dim):
        kg, kb = jax.random.split(k)
        g = jax.random.uniform(kg, (dim,), jnp.float32, 0.5, 1.5)
        bt = jax.random.uniform(kb, (dim,), jnp.float32, -0.5, 0.5)
        return g, bt

    for i in range(len(HIDDEN_DIMS)):                       # encoder blocks
        w, b = _init_linear(keys[i], dims_enc[i], dims_enc[i + 1])
        g, bt = bn_params(keys[6 + i], dims_enc[i + 1])
        params += [w, b, g, bt]
    params += list(_init_linear(keys[2], dims_enc[-1], LATENT_DIM))  # -> latent

    for i in range(len(HIDDEN_DIMS)):                       # decoder blocks
        w, b = _init_linear(keys[3 + i], dims_dec[i], dims_dec[i + 1])
        g, bt = bn_params(keys[8 + i], dims_dec[i + 1])
        params += [w, b, g, bt]
    params += list(_init_linear(keys[5], dims_dec[-1], INPUT_DIM))   # -> out

    return tuple(params)


def pack_params(params, compute_dtype=jnp.bfloat16):
    """Fold & pad the PyTorch-layout parameters into the two kernel slabs.

    * fuses the activation-free latent bottleneck: W34 = W3 @ W4
    * drops every bias that feeds training-mode BN (b1, b2, b3@W4+b4, b5):
      a per-feature constant is exactly cancelled by batch-mean subtraction
    * zero-pads to 128 lanes: weights -> (5,128,128) in compute dtype,
      vectors -> (9,128) f32 with rows [g1,bt1, g2,bt2, g4,bt4, g5,bt5, b6].
    """
    (w1, b1, g1, bt1,
     w2, b2, g2, bt2,
     w3, b3,
     w4, b4, g4, bt4,
     w5, b5, g5, bt5,
     w6, b6) = params
    del b1, b2, b3, b4, b5   # exactly cancelled by training-mode BN

    w34 = jnp.dot(w3, w4, precision=jax.lax.Precision.HIGHEST)

    def pad_w(w):
        return jnp.zeros((PAD, PAD), jnp.float32).at[:w.shape[0], :w.shape[1]].set(w)

    def pad_v(v):
        return jnp.zeros((PAD,), jnp.float32).at[:v.shape[0]].set(v)

    w_slab = jnp.stack([pad_w(w1), pad_w(w2), pad_w(w34),
                        pad_w(w5), pad_w(w6)]).astype(compute_dtype)
    vec_slab = jnp.stack([pad_v(g1), pad_v(bt1), pad_v(g2), pad_v(bt2),
                          pad_v(g4), pad_v(bt4), pad_v(g5), pad_v(bt5),
                          pad_v(b6)])
    return w_slab, vec_slab


# --------------------------------------------------------------------------- #
# Pure-JAX references
# --------------------------------------------------------------------------- #
def _reference_forward_f32(x, params):
    """PyTorch-faithful f32 reference (unfused, all biases, two-pass BN)."""
    (w1, b1, g1, bt1, w2, b2, g2, bt2, w3, b3,
     w4, b4, g4, bt4, w5, b5, g5, bt5, w6, b6) = params
    hp = jax.lax.Precision.HIGHEST

    def lin(h, w, b):
        return jnp.dot(h, w, precision=hp) + b

    def bn_relu(h, g, bt):
        m = h.mean(0, keepdims=True)
        v = ((h - m) ** 2).mean(0, keepdims=True)
        return jnp.maximum(g * (h - m) * jax.lax.rsqrt(v + BN_EPS) + bt, 0.0)

    h = bn_relu(lin(x, w1, b1), g1, bt1)
    h = bn_relu(lin(h, w2, b2), g2, bt2)
    h = lin(h, w3, b3)                       # latent (no activation)
    h = bn_relu(lin(h, w4, b4), g4, bt4)
    h = bn_relu(lin(h, w5, b5), g5, bt5)
    return lin(h, w6, b6)


def _reference_forward_packed(x, w_slab, vec_slab, precision=None):
    """Pure-JAX replica of the kernel math on the packed/fused parameters
    (same dtype flow: compute-dtype matmuls, f32 stats, compute-dtype staged
    pre-activations)."""
    cdt = w_slab.dtype

    def dot(h, w):
        return jnp.dot(h.astype(cdt), w, precision=precision,
                       preferred_element_type=jnp.float32)

    a = dot(x, w_slab[0])
    for l in range(NUM_BN):
        mean = jnp.mean(a, axis=0, keepdims=True)
        var = jnp.maximum(jnp.mean(a * a, axis=0, keepdims=True) - mean * mean, 0.0)
        scale = vec_slab[2 * l][None, :] * jax.lax.rsqrt(var + BN_EPS)
        shift = vec_slab[2 * l + 1][None, :] - mean * scale
        a_staged = a.astype(cdt).astype(jnp.float32)   # kernel stages in cdt
        h = jnp.maximum(a_staged * scale + shift, 0.0)
        a = dot(h, w_slab[l + 1])
    return a + vec_slab[2 * NUM_BN][None, :]


# --------------------------------------------------------------------------- #
# Test
# --------------------------------------------------------------------------- #
if __name__ == "__main__":
    key = jax.random.PRNGKey(0)
    k_x, k_p = jax.random.split(key)
    params = init_params(k_p)

    # bf16 weights / staged activations for the MXU; f32 stats & BN math.
    w_bf16, vec_slab = pack_params(params, compute_dtype=jnp.bfloat16)

    # Small shapes; tile_n is set below the batch size purely to exercise the
    # multi-tile stat accumulation + ragged-tile masking paths (production
    # default is tile_n=2048).
    batch = 256
    x = jax.random.normal(k_x, (batch, INPUT_DIM), jnp.float32)

    out = jax.block_until_ready(
        batchnorm_autoencoder_forward(x, w_bf16, vec_slab, tile_n=64))
    assert out.shape == (batch, INPUT_DIM) and out.dtype == jnp.float32

    # Ragged batch: zero-padded last tile, rows masked out of the BN stats.
    x_ragged = x[:200]
    out_ragged = jax.block_until_ready(
        batchnorm_autoencoder_forward(x_ragged, w_bf16, vec_slab, tile_n=64))
    assert out_ragged.shape == (200, INPUT_DIM)

    # 1) Kernel mechanics (tiling, staged sweeps, masking, padding) vs. a
    #    pure-JAX replica at matched (bf16) precision.  Max-error tolerance is
    #    sized for bf16 re-quantization of the staged pre-activations; the
    #    mean-error bound keeps the check tight in aggregate.
    for got, xin in ((out, x), (out_ragged, x_ragged)):
        ref = _reference_forward_packed(xin, w_bf16, vec_slab)
        err = jnp.abs(got - ref)
        assert float(err.max()) < 4e-2 and float(err.mean()) < 5e-3, \
            (float(err.max()), float(err.mean()))

    # 2) Algebraic simplifications (latent fusion, dropped pre-BN biases) are
    #    exact: fused f32 forward vs. PyTorch-faithful f32 forward.
    w_f32, vec_f32 = pack_params(params, compute_dtype=jnp.float32)
    ref_fused32 = _reference_forward_packed(
        x, w_f32, vec_f32, precision=jax.lax.Precision.HIGHEST)
    ref_faithful = _reference_forward_f32(x, params)
    assert jnp.allclose(ref_fused32, ref_faithful, atol=1e-3, rtol=1e-3), \
        float(jnp.max(jnp.abs(ref_fused32 - ref_faithful)))

    print("KERNEL_OK")
</pallas_src>

<mosaic_0001>
module attributes {stable_mosaic.version = 11 : i64} {
  func.func @_ae_kernel(%arg0: i32, %arg1: i32, %arg2: memref<64x128xf32, #tpu.memory_space<vmem>>, %arg3: memref<5x128x128xbf16, #tpu.memory_space<vmem>>, %arg4: memref<9x128xf32, #tpu.memory_space<vmem>>, %arg5: memref<64x128xf32, #tpu.memory_space<vmem>>, %arg6: memref<4x64x128xbf16, #tpu.memory_space<vmem>>, %arg7: memref<4x128xf32, #tpu.memory_space<vmem>>, %arg8: memref<4x128xf32, #tpu.memory_space<vmem>>, %arg9: memref<2x128xf32, #tpu.memory_space<vmem>>) attributes {dimension_semantics = [#tpu.dimension_semantics<arbitrary>, #tpu.dimension_semantics<arbitrary>], iteration_bounds = array<i64: 5, 4>, scalar_prefetch = 0 : i64, scratch_operands = 4 : i64, tpu.core_type = #tpu.core_type<tc>, window_params = [{transform_indices = @transform_0, window_bounds = array<i64: 64, 128>}, {pipeline_mode = #tpu.pipeline_mode<synchronous>, transform_indices = @transform_1, window_bounds = array<i64: 5, 128, 128>}, {pipeline_mode = #tpu.pipeline_mode<synchronous>, transform_indices = @transform_2, window_bounds = array<i64: 9, 128>}, {transform_indices = @transform_3, window_bounds = array<i64: 64, 128>}]} {
    %c0_i32 = arith.constant 0 : i32
    %0 = arith.cmpi eq, %arg0, %c0_i32 : i32
    %c0_i32_0 = arith.constant 0 : i32
    %1 = arith.cmpi eq, %arg1, %c0_i32_0 : i32
    %2 = arith.andi %0, %1 : i1
    %3 = arith.extui %2 : i1 to i32
    %c0_i32_1 = arith.constant 0 : i32
    %4 = arith.cmpi ne, %3, %c0_i32_1 : i32
    scf.if %4 {
      %cst = arith.constant 0.000000e+00 : f32
      %20 = vector.broadcast %cst : f32 to vector<4x128xf32>
      %c0 = arith.constant 0 : index
      %c0_8 = arith.constant 0 : index
      %21 = vector.load %arg7[%c0, %c0_8] : memref<4x128xf32, #tpu.memory_space<vmem>>, vector<4x128xf32>
      tpu.vector_store %arg7[%c0, %c0_8], %20 {strides = array<i32>} : memref<4x128xf32, #tpu.memory_space<vmem>>, vector<4x128xf32>,
      %cst_9 = arith.constant 0.000000e+00 : f32
      %22 = vector.broadcast %cst_9 : f32 to vector<4x128xf32>
      %c0_10 = arith.constant 0 : index
      %c0_11 = arith.constant 0 : index
      %23 = vector.load %arg8[%c0_10, %c0_11] : memref<4x128xf32, #tpu.memory_space<vmem>>, vector<4x128xf32>
      tpu.vector_store %arg8[%c0_10, %c0_11], %22 {strides = array<i32>} : memref<4x128xf32, #tpu.memory_space<vmem>>, vector<4x128xf32>,
    } else {
    }
    %c0_i32_2 = arith.constant 0 : i32
    %5 = arith.cmpi eq, %arg0, %c0_i32_2 : i32
    %6 = arith.extui %5 : i1 to i32
    %c0_i32_3 = arith.constant 0 : i32
    %7 = arith.cmpi ne, %6, %c0_i32_3 : i32
    scf.if %7 {
      %c0 = arith.constant 0 : index
      %c0_8 = arith.constant 0 : index
      %20 = vector.load %arg2[%c0, %c0_8] : memref<64x128xf32, #tpu.memory_space<vmem>>, vector<64x128xf32>
      %21 = arith.truncf %20 : vector<64x128xf32> to vector<64x128xbf16>
      %c0_9 = arith.constant 0 : index
      %c0_10 = arith.constant 0 : index
      %c0_11 = arith.constant 0 : index
      %22 = vector.load %arg3[%c0_9, %c0_10, %c0_11] : memref<5x128x128xbf16, #tpu.memory_space<vmem>>, vector<1x128x128xbf16>
      %23 = vector.shape_cast %22 : vector<1x128x128xbf16> to vector<128x128xbf16>
      %cst = arith.constant dense<0.000000e+00> : vector<64x128xf32>
      %24 = tpu.matmul %21, %23, %cst {dimension_numbers = #tpu.dot_dimension_numbers<[1], [0], [0], [1], [0, 0, 1, 1], [], []>} : vector<64x128xbf16>, vector<128x128xbf16>, vector<64x128xf32> -> vector<64x128xf32>
      %c0_12 = arith.constant 0 : index
      %c0_13 = arith.constant 0 : index
      %25 = vector.load %arg7[%c0_12, %c0_13] : memref<4x128xf32, #tpu.memory_space<vmem>>, vector<1x128xf32>
      %cst_14 = arith.constant dense<0.000000e+00> : vector<128xf32>
      %26 = vector.multi_reduction <add>, %24, %cst_14 [0] : vector<64x128xf32> to vector<128xf32>
      %27 = vector.shape_cast %26 : vector<128xf32> to vector<1x128xf32>
      %28 = arith.addf %25, %27 : vector<1x128xf32>
      %c0_15 = arith.constant 0 : index
      %c0_16 = arith.constant 0 : index
      %29 = vector.load %arg7[%c0_15, %c0_16] : memref<4x128xf32, #tpu.memory_space<vmem>>, vector<1x128xf32>
      tpu.vector_store %arg7[%c0_15, %c0_16], %28 {strides = array<i32>} : memref<4x128xf32, #tpu.memory_space<vmem>>, vector<1x128xf32>,
      %c0_17 = arith.constant 0 : index
      %c0_18 = arith.constant 0 : index
      %30 = vector.load %arg8[%c0_17, %c0_18] : memref<4x128xf32, #tpu.memory_space<vmem>>, vector<1x128xf32>
      %31 = arith.mulf %24, %24 : vector<64x128xf32>
      %cst_19 = arith.constant dense<0.000000e+00> : vector<128xf32>
      %32 = vector.multi_reduction <add>, %31, %cst_19 [0] : vector<64x128xf32> to vector<128xf32>
      %33 = vector.shape_cast %32 : vector<128xf32> to vector<1x128xf32>
      %34 = arith.addf %30, %33 : vector<1x128xf32>
      %c0_20 = arith.constant 0 : index
      %c0_21 = arith.constant 0 : index
      %35 = vector.load %arg8[%c0_20, %c0_21] : memref<4x128xf32, #tpu.memory_space<vmem>>, vector<1x128xf32>
      tpu.vector_store %arg8[%c0_20, %c0_21], %34 {strides = array<i32>} : memref<4x128xf32, #tpu.memory_space<vmem>>, vector<1x128xf32>,
      %36 = arith.truncf %24 : vector<64x128xf32> to vector<64x128xbf16>
      %37 = arith.index_cast %arg1 : i32 to index
      %c0_22 = arith.constant 0 : index
      %c0_23 = arith.constant 0 : index
      %38 = vector.load %arg6[%37, %c0_22, %c0_23] : memref<4x64x128xbf16, #tpu.memory_space<vmem>>, vector<1x64x128xbf16>
      %39 = vector.shape_cast %38 : vector<1x64x128xbf16> to vector<64x128xbf16>
      %40 = vector.shape_cast %36 : vector<64x128xbf16> to vector<1x64x128xbf16>
      tpu.vector_store %arg6[%37, %c0_22, %c0_23], %40 {strides = array<i32>} : memref<4x64x128xbf16, #tpu.memory_space<vmem>>, vector<1x64x128xbf16>,
    } else {
    }
    %c1_i32 = arith.constant 1 : i32
    %8 = arith.cmpi eq, %arg0, %c1_i32 : i32
    %9 = arith.extui %8 : i1 to i32
    %c0_i32_4 = arith.constant 0 : i32
    %10 = arith.cmpi ne, %9, %c0_i32_4 : i32
    scf.if %10 {
      %c0_i32_8 = arith.constant 0 : i32
      %20 = arith.cmpi eq, %arg1, %c0_i32_8 : i32
      %21 = arith.extui %20 : i1 to i32
      %c0_i32_9 = arith.constant 0 : i32
      %22 = arith.cmpi ne, %21, %c0_i32_9 : i32
      scf.if %22 {
        %c0_30 = arith.constant 0 : index
        %c0_31 = arith.constant 0 : index
        %55 = vector.load %arg7[%c0_30, %c0_31] : memref<4x128xf32, #tpu.memory_space<vmem>>, vector<1x128xf32>
        %cst_32 = arith.constant 3.906250e-03 : f32
        %56 = vector.broadcast %cst_32 : f32 to vector<1x128xf32>
        %57 = arith.mulf %55, %56 : vector<1x128xf32>
        %c0_33 = arith.constant 0 : index
        %c0_34 = arith.constant 0 : index
        %58 = vector.load %arg8[%c0_33, %c0_34] : memref<4x128xf32, #tpu.memory_space<vmem>>, vector<1x128xf32>
        %cst_35 = arith.constant 3.906250e-03 : f32
        %59 = vector.broadcast %cst_35 : f32 to vector<1x128xf32>
        %60 = arith.mulf %58, %59 : vector<1x128xf32>
        %61 = arith.mulf %57, %57 : vector<1x128xf32>
        %62 = arith.subf %60, %61 : vector<1x128xf32>
        %cst_36 = arith.constant 0.000000e+00 : f32
        %63 = vector.broadcast %cst_36 : f32 to vector<1x128xf32>
        %64 = arith.maximumf %62, %63 : vector<1x128xf32>
        %c0_37 = arith.constant 0 : index
        %c0_38 = arith.constant 0 : index
        %65 = vector.load %arg4[%c0_37, %c0_38] : memref<9x128xf32, #tpu.memory_space<vmem>>, vector<1x128xf32>
        %cst_39 = arith.constant 9.99999974E-6 : f32
        %66 = vector.broadcast %cst_39 : f32 to vector<1x128xf32>
        %67 = arith.addf %64, %66 : vector<1x128xf32>
        %68 = math.rsqrt %67 : vector<1x128xf32>
        %69 = arith.mulf %65, %68 : vector<1x128xf32>
        %c0_40 = arith.constant 0 : index
        %c0_41 = arith.constant 0 : index
        %70 = vector.load %arg9[%c0_40, %c0_41] : memref<2x128xf32, #tpu.memory_space<vmem>>, vector<1x128xf32>
        tpu.vector_store %arg9[%c0_40, %c0_41], %69 {strides = array<i32>} : memref<2x128xf32, #tpu.memory_space<vmem>>, vector<1x128xf32>,
        %c1_42 = arith.constant 1 : index
        %c0_43 = arith.constant 0 : index
        %71 = vector.load %arg4[%c1_42, %c0_43] : memref<9x128xf32, #tpu.memory_space<vmem>>, vector<1x128xf32>
        %72 = arith.mulf %57, %69 : vector<1x128xf32>
        %73 = arith.subf %71, %72 : vector<1x128xf32>
        %c1_44 = arith.constant 1 : index
        %c0_45 = arith.constant 0 : index
        %74 = vector.load %arg9[%c1_44, %c0_45] : memref<2x128xf32, #tpu.memory_space<vmem>>, vector<1x128xf32>
        tpu.vector_store %arg9[%c1_44, %c0_45], %73 {strides = array<i32>} : memref<2x128xf32, #tpu.memory_space<vmem>>, vector<1x128xf32>,
      } else {
      }
      %23 = arith.index_cast %arg1 : i32 to index
      %c0 = arith.constant 0 : index
      %c0_10 = arith.constant 0 : index
      %24 = vector.load %arg6[%23, %c0, %c0_10] : memref<4x64x128xbf16, #tpu.memory_space<vmem>>, vector<1x64x128xbf16>
      %25 = vector.shape_cast %24 : vector<1x64x128xbf16> to vector<64x128xbf16>
      %26 = arith.extf %25 : vector<64x128xbf16> to vector<64x128xf32>
      %c0_11 = arith.constant 0 : index
      %c0_12 = arith.constant 0 : index
      %27 = vector.load %arg9[%c0_11, %c0_12] : memref<2x128xf32, #tpu.memory_space<vmem>>, vector<1x128xf32>
      %28 = vector.broadcast %27 : vector<1x128xf32> to vector<64x128xf32>
      %29 = arith.mulf %26, %28 : vector<64x128xf32>
      %c1 = arith.constant 1 : index
      %c0_13 = arith.constant 0 : index
      %30 = vector.load %arg9[%c1, %c0_13] : memref<2x128xf32, #tpu.memory_space<vmem>>, vector<1x128xf32>
      %31 = vector.broadcast %30 : vector<1x128xf32> to vector<64x128xf32>
      %32 = arith.addf %29, %31 : vector<64x128xf32>
      %cst = arith.constant 0.000000e+00 : f32
      %33 = vector.broadcast %cst : f32 to vector<64x128xf32>
      %34 = arith.maximumf %32, %33 : vector<64x128xf32>
      %35 = arith.truncf %34 : vector<64x128xf32> to vector<64x128xbf16>
      %c1_14 = arith.constant 1 : index
      %c0_15 = arith.constant 0 : index
      %c0_16 = arith.constant 0 : index
      %36 = vector.load %arg3[%c1_14, %c0_15, %c0_16] : memref<5x128x128xbf16, #tpu.memory_space<vmem>>, vector<1x128x128xbf16>
      %37 = vector.shape_cast %36 : vector<1x128x128xbf16> to vector<128x128xbf16>
      %cst_17 = arith.constant dense<0.000000e+00> : vector<64x128xf32>
      %38 = tpu.matmul %35, %37, %cst_17 {dimension_numbers = #tpu.dot_dimension_numbers<[1], [0], [0], [1], [0, 0, 1, 1], [], []>} : vector<64x128xbf16>, vector<128x128xbf16>, vector<64x128xf32> -> vector<64x128xf32>
      %c1_18 = arith.constant 1 : index
      %c0_19 = arith.constant 0 : index
      %39 = vector.load %arg7[%c1_18, %c0_19] : memref<4x128xf32, #tpu.memory_space<vmem>>, vector<1x128xf32>
      %cst_20 = arith.constant dense<0.000000e+00> : vector<128xf32>
      %40 = vector.multi_reduction <add>, %38, %cst_20 [0] : vector<64x128xf32> to vector<128xf32>
      %41 = vector.shape_cast %40 : vector<128xf32> to vector<1x128xf32>
      %42 = arith.addf %39, %41 : vector<1x128xf32>
      %c1_21 = arith.constant 1 : index
      %c0_22 = arith.constant 0 : index
      %43 = vector.load %arg7[%c1_21, %c0_22] : memref<4x128xf32, #tpu.memory_space<vmem>>, vector<1x128xf32>
      tpu.vector_store %arg7[%c1_21, %c0_22], %42 {strides = array<i32>} : memref<4x128xf32, #tpu.memory_space<vmem>>, vector<1x128xf32>,
      %c1_23 = arith.constant 1 : index
      %c0_24 = arith.constant 0 : index
      %44 = vector.load %arg8[%c1_23, %c0_24] : memref<4x128xf32, #tpu.memory_space<vmem>>, vector<1x128xf32>
      %45 = arith.mulf %38, %38 : vector<64x128xf32>
      %cst_25 = arith.constant dense<0.000000e+00> : vector<128xf32>
      %46 = vector.multi_reduction <add>, %45, %cst_25 [0] : vector<64x128xf32> to vector<128xf32>
      %47 = vector.shape_cast %46 : vector<128xf32> to vector<1x128xf32>
      %48 = arith.addf %44, %47 : vector<1x128xf32>
      %c1_26 = arith.constant 1 : index
      %c0_27 = arith.constant 0 : index
      %49 = vector.load %arg8[%c1_26, %c0_27] : memref<4x128xf32, #tpu.memory_space<vmem>>, vector<1x128xf32>
      tpu.vector_store %arg8[%c1_26, %c0_27], %48 {strides = array<i32>} : memref<4x128xf32, #tpu.memory_space<vmem>>, vector<1x128xf32>,
      %50 = arith.truncf %38 : vector<64x128xf32> to vector<64x128xbf16>
      %51 = arith.index_cast %arg1 : i32 to index
      %c0_28 = arith.constant 0 : index
      %c0_29 = arith.constant 0 : index
      %52 = vector.load %arg6[%51, %c0_28, %c0_29] : memref<4x64x128xbf16, #tpu.memory_space<vmem>>, vector<1x64x128xbf16>
      %53 = vector.shape_cast %52 : vector<1x64x128xbf16> to vector<64x128xbf16>
      %54 = vector.shape_cast %50 : vector<64x128xbf16> to vector<1x64x128xbf16>
      tpu.vector_store %arg6[%51, %c0_28, %c0_29], %54 {strides = array<i32>} : memref<4x64x128xbf16, #tpu.memory_space<vmem>>, vector<1x64x128xbf16>,
    } else {
    }
    %c2_i32 = arith.constant 2 : i32
    %11 = arith.cmpi eq, %arg0, %c2_i32 : i32
    %12 = arith.extui %11 : i1 to i32
    %c0_i32_5 = arith.constant 0 : i32
    %13 = arith.cmpi ne, %12, %c0_i32_5 : i32
    scf.if %13 {
      %c0_i32_8 = arith.constant 0 : i32
      %20 = arith.cmpi eq, %arg1, %c0_i32_8 : i32
      %21 = arith.extui %20 : i1 to i32
      %c0_i32_9 = arith.constant 0 : i32
      %22 = arith.cmpi ne, %21, %c0_i32_9 : i32
      scf.if %22 {
        %c1_29 = arith.constant 1 : index
        %c0_30 = arith.constant 0 : index
        %55 = vector.load %arg7[%c1_29, %c0_30] : memref<4x128xf32, #tpu.memory_space<vmem>>, vector<1x128xf32>
        %cst_31 = arith.constant 3.906250e-03 : f32
        %56 = vector.broadcast %cst_31 : f32 to vector<1x128xf32>
        %57 = arith.mulf %55, %56 : vector<1x128xf32>
        %c1_32 = arith.constant 1 : index
        %c0_33 = arith.constant 0 : index
        %58 = vector.load %arg8[%c1_32, %c0_33] : memref<4x128xf32, #tpu.memory_space<vmem>>, vector<1x128xf32>
        %cst_34 = arith.constant 3.906250e-03 : f32
        %59 = vector.broadcast %cst_34 : f32 to vector<1x128xf32>
        %60 = arith.mulf %58, %59 : vector<1x128xf32>
        %61 = arith.mulf %57, %57 : vector<1x128xf32>
        %62 = arith.subf %60, %61 : vector<1x128xf32>
        %cst_35 = arith.constant 0.000000e+00 : f32
        %63 = vector.broadcast %cst_35 : f32 to vector<1x128xf32>
        %64 = arith.maximumf %62, %63 : vector<1x128xf32>
        %c2_36 = arith.constant 2 : index
        %c0_37 = arith.constant 0 : index
        %65 = vector.load %arg4[%c2_36, %c0_37] : memref<9x128xf32, #tpu.memory_space<vmem>>, vector<1x128xf32>
        %cst_38 = arith.constant 9.99999974E-6 : f32
        %66 = vector.broadcast %cst_38 : f32 to vector<1x128xf32>
        %67 = arith.addf %64, %66 : vector<1x128xf32>
        %68 = math.rsqrt %67 : vector<1x128xf32>
        %69 = arith.mulf %65, %68 : vector<1x128xf32>
        %c0_39 = arith.constant 0 : index
        %c0_40 = arith.constant 0 : index
        %70 = vector.load %arg9[%c0_39, %c0_40] : memref<2x128xf32, #tpu.memory_space<vmem>>, vector<1x128xf32>
        tpu.vector_store %arg9[%c0_39, %c0_40], %69 {strides = array<i32>} : memref<2x128xf32, #tpu.memory_space<vmem>>, vector<1x128xf32>,
        %c3 = arith.constant 3 : index
        %c0_41 = arith.constant 0 : index
        %71 = vector.load %arg4[%c3, %c0_41] : memref<9x128xf32, #tpu.memory_space<vmem>>, vector<1x128xf32>
        %72 = arith.mulf %57, %69 : vector<1x128xf32>
        %73 = arith.subf %71, %72 : vector<1x128xf32>
        %c1_42 = arith.constant 1 : index
        %c0_43 = arith.constant 0 : index
        %74 = vector.load %arg9[%c1_42, %c0_43] : memref<2x128xf32, #tpu.memory_space<vmem>>, vector<1x128xf32>
        tpu.vector_store %arg9[%c1_42, %c0_43], %73 {strides = array<i32>} : memref<2x128xf32, #tpu.memory_space<vmem>>, vector<1x128xf32>,
      } else {
      }
      %23 = arith.index_cast %arg1 : i32 to index
      %c0 = arith.constant 0 : index
      %c0_10 = arith.constant 0 : index
      %24 = vector.load %arg6[%23, %c0, %c0_10] : memref<4x64x128xbf16, #tpu.memory_space<vmem>>, vector<1x64x128xbf16>
      %25 = vector.shape_cast %24 : vector<1x64x128xbf16> to vector<64x128xbf16>
      %26 = arith.extf %25 : vector<64x128xbf16> to vector<64x128xf32>
      %c0_11 = arith.constant 0 : index
      %c0_12 = arith.constant 0 : index
      %27 = vector.load %arg9[%c0_11, %c0_12] : memref<2x128xf32, #tpu.memory_space<vmem>>, vector<1x128xf32>
      %28 = vector.broadcast %27 : vector<1x128xf32> to vector<64x128xf32>
      %29 = arith.mulf %26, %28 : vector<64x128xf32>
      %c1 = arith.constant 1 : index
      %c0_13 = arith.constant 0 : index
      %30 = vector.load %arg9[%c1, %c0_13] : memref<2x128xf32, #tpu.memory_space<vmem>>, vector<1x128xf32>
      %31 = vector.broadcast %30 : vector<1x128xf32> to vector<64x128xf32>
      %32 = arith.addf %29, %31 : vector<64x128xf32>
      %cst = arith.constant 0.000000e+00 : f32
      %33 = vector.broadcast %cst : f32 to vector<64x128xf32>
      %34 = arith.maximumf %32, %33 : vector<64x128xf32>
      %35 = arith.truncf %34 : vector<64x128xf32> to vector<64x128xbf16>
      %c2 = arith.constant 2 : index
      %c0_14 = arith.constant 0 : index
      %c0_15 = arith.constant 0 : index
      %36 = vector.load %arg3[%c2, %c0_14, %c0_15] : memref<5x128x128xbf16, #tpu.memory_space<vmem>>, vector<1x128x128xbf16>
      %37 = vector.shape_cast %36 : vector<1x128x128xbf16> to vector<128x128xbf16>
      %cst_16 = arith.constant dense<0.000000e+00> : vector<64x128xf32>
      %38 = tpu.matmul %35, %37, %cst_16 {dimension_numbers = #tpu.dot_dimension_numbers<[1], [0], [0], [1], [0, 0, 1, 1], [], []>} : vector<64x128xbf16>, vector<128x128xbf16>, vector<64x128xf32> -> vector<64x128xf32>
      %c2_17 = arith.constant 2 : index
      %c0_18 = arith.constant 0 : index
      %39 = vector.load %arg7[%c2_17, %c0_18] : memref<4x128xf32, #tpu.memory_space<vmem>>, vector<1x128xf32>
      %cst_19 = arith.constant dense<0.000000e+00> : vector<128xf32>
      %40 = vector.multi_reduction <add>, %38, %cst_19 [0] : vector<64x128xf32> to vector<128xf32>
      %41 = vector.shape_cast %40 : vector<128xf32> to vector<1x128xf32>
      %42 = arith.addf %39, %41 : vector<1x128xf32>
      %c2_20 = arith.constant 2 : index
      %c0_21 = arith.constant 0 : index
      %43 = vector.load %arg7[%c2_20, %c0_21] : memref<4x128xf32, #tpu.memory_space<vmem>>, vector<1x128xf32>
      tpu.vector_store %arg7[%c2_20, %c0_21], %42 {strides = array<i32>} : memref<4x128xf32, #tpu.memory_space<vmem>>, vector<1x128xf32>,
      %c2_22 = arith.constant 2 : index
      %c0_23 = arith.constant 0 : index
      %44 = vector.load %arg8[%c2_22, %c0_23] : memref<4x128xf32, #tpu.memory_space<vmem>>, vector<1x128xf32>
      %45 = arith.mulf %38, %38 : vector<64x128xf32>
      %cst_24 = arith.constant dense<0.000000e+00> : vector<128xf32>
      %46 = vector.multi_reduction <add>, %45, %cst_24 [0] : vector<64x128xf32> to vector<128xf32>
      %47 = vector.shape_cast %46 : vector<128xf32> to vector<1x128xf32>
      %48 = arith.addf %44, %47 : vector<1x128xf32>
      %c2_25 = arith.constant 2 : index
      %c0_26 = arith.constant 0 : index
      %49 = vector.load %arg8[%c2_25, %c0_26] : memref<4x128xf32, #tpu.memory_space<vmem>>, vector<1x128xf32>
      tpu.vector_store %arg8[%c2_25, %c0_26], %48 {strides = array<i32>} : memref<4x128xf32, #tpu.memory_space<vmem>>, vector<1x128xf32>,
      %50 = arith.truncf %38 : vector<64x128xf32> to vector<64x128xbf16>
      %51 = arith.index_cast %arg1 : i32 to index
      %c0_27 = arith.constant 0 : index
      %c0_28 = arith.constant 0 : index
      %52 = vector.load %arg6[%51, %c0_27, %c0_28] : memref<4x64x128xbf16, #tpu.memory_space<vmem>>, vector<1x64x128xbf16>
      %53 = vector.shape_cast %52 : vector<1x64x128xbf16> to vector<64x128xbf16>
      %54 = vector.shape_cast %50 : vector<64x128xbf16> to vector<1x64x128xbf16>
      tpu.vector_store %arg6[%51, %c0_27, %c0_28], %54 {strides = array<i32>} : memref<4x64x128xbf16, #tpu.memory_space<vmem>>, vector<1x64x128xbf16>,
    } else {
    }
    %c3_i32 = arith.constant 3 : i32
    %14 = arith.cmpi eq, %arg0, %c3_i32 : i32
    %15 = arith.extui %14 : i1 to i32
    %c0_i32_6 = arith.constant 0 : i32
    %16 = arith.cmpi ne, %15, %c0_i32_6 : i32
    scf.if %16 {
      %c0_i32_8 = arith.constant 0 : i32
      %20 = arith.cmpi eq, %arg1, %c0_i32_8 : i32
      %21 = arith.extui %20 : i1 to i32
      %c0_i32_9 = arith.constant 0 : i32
      %22 = arith.cmpi ne, %21, %c0_i32_9 : i32
      scf.if %22 {
        %c2 = arith.constant 2 : index
        %c0_29 = arith.constant 0 : index
        %55 = vector.load %arg7[%c2, %c0_29] : memref<4x128xf32, #tpu.memory_space<vmem>>, vector<1x128xf32>
        %cst_30 = arith.constant 3.906250e-03 : f32
        %56 = vector.broadcast %cst_30 : f32 to vector<1x128xf32>
        %57 = arith.mulf %55, %56 : vector<1x128xf32>
        %c2_31 = arith.constant 2 : index
        %c0_32 = arith.constant 0 : index
        %58 = vector.load %arg8[%c2_31, %c0_32] : memref<4x128xf32, #tpu.memory_space<vmem>>, vector<1x128xf32>
        %cst_33 = arith.constant 3.906250e-03 : f32
        %59 = vector.broadcast %cst_33 : f32 to vector<1x128xf32>
        %60 = arith.mulf %58, %59 : vector<1x128xf32>
        %61 = arith.mulf %57, %57 : vector<1x128xf32>
        %62 = arith.subf %60, %61 : vector<1x128xf32>
        %cst_34 = arith.constant 0.000000e+00 : f32
        %63 = vector.broadcast %cst_34 : f32 to vector<1x128xf32>
        %64 = arith.maximumf %62, %63 : vector<1x128xf32>
        %c4 = arith.constant 4 : index
        %c0_35 = arith.constant 0 : index
        %65 = vector.load %arg4[%c4, %c0_35] : memref<9x128xf32, #tpu.memory_space<vmem>>, vector<1x128xf32>
        %cst_36 = arith.constant 9.99999974E-6 : f32
        %66 = vector.broadcast %cst_36 : f32 to vector<1x128xf32>
        %67 = arith.addf %64, %66 : vector<1x128xf32>
        %68 = math.rsqrt %67 : vector<1x128xf32>
        %69 = arith.mulf %65, %68 : vector<1x128xf32>
        %c0_37 = arith.constant 0 : index
        %c0_38 = arith.constant 0 : index
        %70 = vector.load %arg9[%c0_37, %c0_38] : memref<2x128xf32, #tpu.memory_space<vmem>>, vector<1x128xf32>
        tpu.vector_store %arg9[%c0_37, %c0_38], %69 {strides = array<i32>} : memref<2x128xf32, #tpu.memory_space<vmem>>, vector<1x128xf32>,
        %c5 = arith.constant 5 : index
        %c0_39 = arith.constant 0 : index
        %71 = vector.load %arg4[%c5, %c0_39] : memref<9x128xf32, #tpu.memory_space<vmem>>, vector<1x128xf32>
        %72 = arith.mulf %57, %69 : vector<1x128xf32>
        %73 = arith.subf %71, %72 : vector<1x128xf32>
        %c1_40 = arith.constant 1 : index
        %c0_41 = arith.constant 0 : index
        %74 = vector.load %arg9[%c1_40, %c0_41] : memref<2x128xf32, #tpu.memory_space<vmem>>, vector<1x128xf32>
        tpu.vector_store %arg9[%c1_40, %c0_41], %73 {strides = array<i32>} : memref<2x128xf32, #tpu.memory_space<vmem>>, vector<1x128xf32>,
      } else {
      }
      %23 = arith.index_cast %arg1 : i32 to index
      %c0 = arith.constant 0 : index
      %c0_10 = arith.constant 0 : index
      %24 = vector.load %arg6[%23, %c0, %c0_10] : memref<4x64x128xbf16, #tpu.memory_space<vmem>>, vector<1x64x128xbf16>
      %25 = vector.shape_cast %24 : vector<1x64x128xbf16> to vector<64x128xbf16>
      %26 = arith.extf %25 : vector<64x128xbf16> to vector<64x128xf32>
      %c0_11 = arith.constant 0 : index
      %c0_12 = arith.constant 0 : index
      %27 = vector.load %arg9[%c0_11, %c0_12] : memref<2x128xf32, #tpu.memory_space<vmem>>, vector<1x128xf32>
      %28 = vector.broadcast %27 : vector<1x128xf32> to vector<64x128xf32>
      %29 = arith.mulf %26, %28 : vector<64x128xf32>
      %c1 = arith.constant 1 : index
      %c0_13 = arith.constant 0 : index
      %30 = vector.load %arg9[%c1, %c0_13] : memref<2x128xf32, #tpu.memory_space<vmem>>, vector<1x128xf32>
      %31 = vector.broadcast %30 : vector<1x128xf32> to vector<64x128xf32>
      %32 = arith.addf %29, %31 : vector<64x128xf32>
      %cst = arith.constant 0.000000e+00 : f32
      %33 = vector.broadcast %cst : f32 to vector<64x128xf32>
      %34 = arith.maximumf %32, %33 : vector<64x128xf32>
      %35 = arith.truncf %34 : vector<64x128xf32> to vector<64x128xbf16>
      %c3 = arith.constant 3 : index
      %c0_14 = arith.constant 0 : index
      %c0_15 = arith.constant 0 : index
      %36 = vector.load %arg3[%c3, %c0_14, %c0_15] : memref<5x128x128xbf16, #tpu.memory_space<vmem>>, vector<1x128x128xbf16>
      %37 = vector.shape_cast %36 : vector<1x128x128xbf16> to vector<128x128xbf16>
      %cst_16 = arith.constant dense<0.000000e+00> : vector<64x128xf32>
      %38 = tpu.matmul %35, %37, %cst_16 {dimension_numbers = #tpu.dot_dimension_numbers<[1], [0], [0], [1], [0, 0, 1, 1], [], []>} : vector<64x128xbf16>, vector<128x128xbf16>, vector<64x128xf32> -> vector<64x128xf32>
      %c3_17 = arith.constant 3 : index
      %c0_18 = arith.constant 0 : index
      %39 = vector.load %arg7[%c3_17, %c0_18] : memref<4x128xf32, #tpu.memory_space<vmem>>, vector<1x128xf32>
      %cst_19 = arith.constant dense<0.000000e+00> : vector<128xf32>
      %40 = vector.multi_reduction <add>, %38, %cst_19 [0] : vector<64x128xf32> to vector<128xf32>
      %41 = vector.shape_cast %40 : vector<128xf32> to vector<1x128xf32>
      %42 = arith.addf %39, %41 : vector<1x128xf32>
      %c3_20 = arith.constant 3 : index
      %c0_21 = arith.constant 0 : index
      %43 = vector.load %arg7[%c3_20, %c0_21] : memref<4x128xf32, #tpu.memory_space<vmem>>, vector<1x128xf32>
      tpu.vector_store %arg7[%c3_20, %c0_21], %42 {strides = array<i32>} : memref<4x128xf32, #tpu.memory_space<vmem>>, vector<1x128xf32>,
      %c3_22 = arith.constant 3 : index
      %c0_23 = arith.constant 0 : index
      %44 = vector.load %arg8[%c3_22, %c0_23] : memref<4x128xf32, #tpu.memory_space<vmem>>, vector<1x128xf32>
      %45 = arith.mulf %38, %38 : vector<64x128xf32>
      %cst_24 = arith.constant dense<0.000000e+00> : vector<128xf32>
      %46 = vector.multi_reduction <add>, %45, %cst_24 [0] : vector<64x128xf32> to vector<128xf32>
      %47 = vector.shape_cast %46 : vector<128xf32> to vector<1x128xf32>
      %48 = arith.addf %44, %47 : vector<1x128xf32>
      %c3_25 = arith.constant 3 : index
      %c0_26 = arith.constant 0 : index
      %49 = vector.load %arg8[%c3_25, %c0_26] : memref<4x128xf32, #tpu.memory_space<vmem>>, vector<1x128xf32>
      tpu.vector_store %arg8[%c3_25, %c0_26], %48 {strides = array<i32>} : memref<4x128xf32, #tpu.memory_space<vmem>>, vector<1x128xf32>,
      %50 = arith.truncf %38 : vector<64x128xf32> to vector<64x128xbf16>
      %51 = arith.index_cast %arg1 : i32 to index
      %c0_27 = arith.constant 0 : index
      %c0_28 = arith.constant 0 : index
      %52 = vector.load %arg6[%51, %c0_27, %c0_28] : memref<4x64x128xbf16, #tpu.memory_space<vmem>>, vector<1x64x128xbf16>
      %53 = vector.shape_cast %52 : vector<1x64x128xbf16> to vector<64x128xbf16>
      %54 = vector.shape_cast %50 : vector<64x128xbf16> to vector<1x64x128xbf16>
      tpu.vector_store %arg6[%51, %c0_27, %c0_28], %54 {strides = array<i32>} : memref<4x64x128xbf16, #tpu.memory_space<vmem>>, vector<1x64x128xbf16>,
    } else {
    }
    %c4_i32 = arith.constant 4 : i32
    %17 = arith.cmpi eq, %arg0, %c4_i32 : i32
    %18 = arith.extui %17 : i1 to i32
    %c0_i32_7 = arith.constant 0 : i32
    %19 = arith.cmpi ne, %18, %c0_i32_7 : i32
    scf.if %19 {
      %c0_i32_8 = arith.constant 0 : i32
      %20 = arith.cmpi eq, %arg1, %c0_i32_8 : i32
      %21 = arith.extui %20 : i1 to i32
      %c0_i32_9 = arith.constant 0 : i32
      %22 = arith.cmpi ne, %21, %c0_i32_9 : i32
      scf.if %22 {
        %c3 = arith.constant 3 : index
        %c0_20 = arith.constant 0 : index
        %43 = vector.load %arg7[%c3, %c0_20] : memref<4x128xf32, #tpu.memory_space<vmem>>, vector<1x128xf32>
        %cst_21 = arith.constant 3.906250e-03 : f32
        %44 = vector.broadcast %cst_21 : f32 to vector<1x128xf32>
        %45 = arith.mulf %43, %44 : vector<1x128xf32>
        %c3_22 = arith.constant 3 : index
        %c0_23 = arith.constant 0 : index
        %46 = vector.load %arg8[%c3_22, %c0_23] : memref<4x128xf32, #tpu.memory_space<vmem>>, vector<1x128xf32>
        %cst_24 = arith.constant 3.906250e-03 : f32
        %47 = vector.broadcast %cst_24 : f32 to vector<1x128xf32>
        %48 = arith.mulf %46, %47 : vector<1x128xf32>
        %49 = arith.mulf %45, %45 : vector<1x128xf32>
        %50 = arith.subf %48, %49 : vector<1x128xf32>
        %cst_25 = arith.constant 0.000000e+00 : f32
        %51 = vector.broadcast %cst_25 : f32 to vector<1x128xf32>
        %52 = arith.maximumf %50, %51 : vector<1x128xf32>
        %c6 = arith.constant 6 : index
        %c0_26 = arith.constant 0 : index
        %53 = vector.load %arg4[%c6, %c0_26] : memref<9x128xf32, #tpu.memory_space<vmem>>, vector<1x128xf32>
        %cst_27 = arith.constant 9.99999974E-6 : f32
        %54 = vector.broadcast %cst_27 : f32 to vector<1x128xf32>
        %55 = arith.addf %52, %54 : vector<1x128xf32>
        %56 = math.rsqrt %55 : vector<1x128xf32>
        %57 = arith.mulf %53, %56 : vector<1x128xf32>
        %c0_28 = arith.constant 0 : index
        %c0_29 = arith.constant 0 : index
        %58 = vector.load %arg9[%c0_28, %c0_29] : memref<2x128xf32, #tpu.memory_space<vmem>>, vector<1x128xf32>
        tpu.vector_store %arg9[%c0_28, %c0_29], %57 {strides = array<i32>} : memref<2x128xf32, #tpu.memory_space<vmem>>, vector<1x128xf32>,
        %c7 = arith.constant 7 : index
        %c0_30 = arith.constant 0 : index
        %59 = vector.load %arg4[%c7, %c0_30] : memref<9x128xf32, #tpu.memory_space<vmem>>, vector<1x128xf32>
        %60 = arith.mulf %45, %57 : vector<1x128xf32>
        %61 = arith.subf %59, %60 : vector<1x128xf32>
        %c1_31 = arith.constant 1 : index
        %c0_32 = arith.constant 0 : index
        %62 = vector.load %arg9[%c1_31, %c0_32] : memref<2x128xf32, #tpu.memory_space<vmem>>, vector<1x128xf32>
        tpu.vector_store %arg9[%c1_31, %c0_32], %61 {strides = array<i32>} : memref<2x128xf32, #tpu.memory_space<vmem>>, vector<1x128xf32>,
      } else {
      }
      %23 = arith.index_cast %arg1 : i32 to index
      %c0 = arith.constant 0 : index
      %c0_10 = arith.constant 0 : index
      %24 = vector.load %arg6[%23, %c0, %c0_10] : memref<4x64x128xbf16, #tpu.memory_space<vmem>>, vector<1x64x128xbf16>
      %25 = vector.shape_cast %24 : vector<1x64x128xbf16> to vector<64x128xbf16>
      %26 = arith.extf %25 : vector<64x128xbf16> to vector<64x128xf32>
      %c0_11 = arith.constant 0 : index
      %c0_12 = arith.constant 0 : index
      %27 = vector.load %arg9[%c0_11, %c0_12] : memref<2x128xf32, #tpu.memory_space<vmem>>, vector<1x128xf32>
      %28 = vector.broadcast %27 : vector<1x128xf32> to vector<64x128xf32>
      %29 = arith.mulf %26, %28 : vector<64x128xf32>
      %c1 = arith.constant 1 : index
      %c0_13 = arith.constant 0 : index
      %30 = vector.load %arg9[%c1, %c0_13] : memref<2x128xf32, #tpu.memory_space<vmem>>, vector<1x128xf32>
      %31 = vector.broadcast %30 : vector<1x128xf32> to vector<64x128xf32>
      %32 = arith.addf %29, %31 : vector<64x128xf32>
      %cst = arith.constant 0.000000e+00 : f32
      %33 = vector.broadcast %cst : f32 to vector<64x128xf32>
      %34 = arith.maximumf %32, %33 : vector<64x128xf32>
      %35 = arith.truncf %34 : vector<64x128xf32> to vector<64x128xbf16>
      %c4 = arith.constant 4 : index
      %c0_14 = arith.constant 0 : index
      %c0_15 = arith.constant 0 : index
      %36 = vector.load %arg3[%c4, %c0_14, %c0_15] : memref<5x128x128xbf16, #tpu.memory_space<vmem>>, vector<1x128x128xbf16>
      %37 = vector.shape_cast %36 : vector<1x128x128xbf16> to vector<128x128xbf16>
      %cst_16 = arith.constant dense<0.000000e+00> : vector<64x128xf32>
      %38 = tpu.matmul %35, %37, %cst_16 {dimension_numbers = #tpu.dot_dimension_numbers<[1], [0], [0], [1], [0, 0, 1, 1], [], []>} : vector<64x128xbf16>, vector<128x128xbf16>, vector<64x128xf32> -> vector<64x128xf32>
      %c8 = arith.constant 8 : index
      %c0_17 = arith.constant 0 : index
      %39 = vector.load %arg4[%c8, %c0_17] : memref<9x128xf32, #tpu.memory_space<vmem>>, vector<1x128xf32>
      %40 = vector.broadcast %39 : vector<1x128xf32> to vector<64x128xf32>
      %41 = arith.addf %38, %40 : vector<64x128xf32>
      %c0_18 = arith.constant 0 : index
      %c0_19 = arith.constant 0 : index
      %42 = vector.load %arg5[%c0_18, %c0_19] : memref<64x128xf32, #tpu.memory_space<vmem>>, vector<64x128xf32>
      tpu.vector_store %arg5[%c0_18, %c0_19], %41 {strides = array<i32>} : memref<64x128xf32, #tpu.memory_space<vmem>>, vector<64x128xf32>,
    } else {
    }
    return
  }
  func.func @transform_0(%arg0: i32, %arg1: i32) -> (i32, i32) {
    %c0_i32 = arith.constant 0 : i32
    %0 = arith.cmpi eq, %arg0, %c0_i32 : i32
    %c0_i32_0 = arith.constant 0 : i32
    %1 = arith.select %0, %arg1, %c0_i32_0 : i32
    %c0_i32_1 = arith.constant 0 : i32
    %c0_i32_2 = arith.constant 0 : i32
    return %1, %c0_i32_1 : i32, i32
  }
  func.func @transform_1(%arg0: i32, %arg1: i32) -> (i32, i32, i32) {
    %c0_i32 = arith.constant 0 : i32
    %c0_i32_0 = arith.constant 0 : i32
    %c0_i32_1 = arith.constant 0 : i32
    %c0_i32_2 = arith.constant 0 : i32
    return %c0_i32, %c0_i32_0, %c0_i32_1 : i32, i32, i32
  }
  func.func @transform_2(%arg0: i32, %arg1: i32) -> (i32, i32) {
    %c0_i32 = arith.constant 0 : i32
    %c0_i32_0 = arith.constant 0 : i32
    %c0_i32_1 = arith.constant 0 : i32
    return %c0_i32, %c0_i32_0 : i32, i32
  }
  func.func @transform_3(%arg0: i32, %arg1: i32) -> (i32, i32) {
    %c4_i32 = arith.constant 4 : i32
    %0 = arith.cmpi eq, %arg0, %c4_i32 : i32
    %c0_i32 = arith.constant 0 : i32
    %1 = arith.select %0, %arg1, %c0_i32 : i32
    %c0_i32_0 = arith.constant 0 : i32
    %c0_i32_1 = arith.constant 0 : i32
    return %1, %c0_i32_0 : i32, i32
  }
}

</mosaic_0001>

<bundles_post_ra>
// kernel: batchnorm_autoencoder_forward.1
= control target key start
LH: loop header
LB: loop body
LE: loop exit
PB: predicated region body
PF: predicated region fallthrough
CT: control target
= control target key end

     0   :  { %s2714_s0 = inlined_call_operand.hbm [shape: f32[256,128], index: 0, kind: input, shape index: {}]   ;;  %s2715_s1 = inlined_call_operand.hbm [shape: bf16[5,128,128], index: 1, kind: input, shape index: {}]   ;;  %s2716_s2 = inlined_call_operand.hbm [shape: f32[9,128], index: 2, kind: input, shape index: {}]   ;;  %s2717_s3 = inlined_call_operand.hbm [shape: f32[256,128], index: 3, kind: output, shape index: {}]  }
   0x1   :  { %2730 = sst [smem:[#allocation20_spill]] %s2715_s1 }
   0x2   :  { %2731 = sst [smem:[#allocation21_spill]] %s2716_s2 }
   0x3   :  { %2732 = sst [smem:[#allocation22_spill]] %s2717_s3 }
   0x4   :  { %8 = vsyncpa [#allocation7], 0 }
   0x5   :  { %10 = vsyncpa [#allocation7 + $0x1], 0 }
   0x6   :  { %11 = vsyncpa [#allocation10], 0 }
   0x7   :  { %12 = vsyncpa [#allocation8], 0 }
   0x8   :  { %14 = vsyncpa [#allocation8 + $0x1], 0  ;;  %s2337_s12 = smov 0   ;;  %s2339_s13 = smov 0  }
   0x9   :  { %s2341_s14 = smov 0   ;;  %s2343_s15 = smov 0  }
   0xa   :  { %s2345_s16 = smov 0   ;;  %s2347_s17 = smov 0  }
   0xb   :  { %s2349_s18 = smov 0   ;;  %s2351_s19 = smov 0  }
   0xc   :  { %s2353_s20 = smov 0   ;;  %s2355_s21 = smov 0  }
   0xd   :  { %s2357_s22 = smov 0  }
   0xe LB: > { %2733 = sst [smem:[#allocation16_spill]] %s2264_s12  ;;  %s1560_s23 = sadd.s32 4294967295, %s2304_s22   ;;  %s2304_s22 = sphi %s2357_s22, %s20_s22   ;;  %s2300_s21 = sphi %s2355_s21, %s2760_s21   ;;  %s2296_s20 = sphi %s2353_s20, %s2768_s20   ;;  %s2292_s19 = sphi %s2351_s19, %s2759_s19   ;;  %s2288_s18 = sphi %s2349_s18, %s2767_s18   ;;  %s2284_s17 = sphi %s2347_s17, %s2766_s17   ;;  %s2280_s16 = sphi %s2345_s16, %s2765_s16   ;;  %s2276_s15 = sphi %s2343_s15, %s2764_s15   ;;  %s2272_s14 = sphi %s2341_s14, %s2763_s14   ;;  %s2268_s13 = sphi %s2339_s13, %s2762_s13   ;;  %s2264_s12 = sphi %s2337_s12, %s2761_s12  }
   0xf   : > { %2734 = sst [smem:[#allocation17_spill]] %s2300_s21  ;;  %s1561_s24 = sadd.s32 4294967294, %s2304_s22  }
  0x10   : > { %p56_p0 = scmp.ne.s32.totalorder %s2280_s16, %s2276_s15  ;;  %p2393_p1 = scmp.eq.s32.totalorder %s1560_s23, 0 }
  0x11   : > { %p125_p2 = scmp.ne.s32.totalorder %s2272_s14, %s2268_s13  ;;  %p126_p4 = scmp.eq.s32.totalorder %s1560_s23, 19 }
  0x12   : > { %s2735_s25 = scalar_select %p2393_p1, 1, 0 }
  0x13   : > { %p2402_p3 = por %p2393_p1, %p56_p0  ;;  %p131_p5 = scmp.ne.s32.totalorder %s2268_s13, %s2264_s12 }
  0x14   : > { %p132_p6 = scmp.eq.s32.totalorder %s1561_s24, 19  ;;  %p2408_p7 = por %p126_p4, %p125_p2 }
  0x15   : > { %s2736_s27 = scalar_select %p2402_p3, 1, 0 }
  0x16   : > { %s2737_s28 = scalar_select %p2408_p7, 1, 0 }
  0x17   : > { %p1562_p8 = scmp.ge.s32.totalorder %s2304_s22, 1  ;;  %p2413_p9 = por %p132_p6, %p131_p5 }
  0x18   : > { %p139_p10 = scmp.lt.s32.totalorder %s2304_s22, 21  ;;  %s2306_s4 = smov [#allocation9]  }
  0x19   : > { %s2738_s29 = scalar_select %p2413_p9, 1, 0 }
  0x1a   : > { %p2418_p11 = pnand %p1562_p8, %p139_p10  ;;  %s151_s5 = sshll.u32 %s2306_s4, 4  ;;  %s152_s5 = int_to_ptr.vmem [resolvable:$true] %s151_s5 }
  0x1b   : > { %2739 = sst [smem:[#allocation18_spill]] %s2738_s29  ;;  %s2307_s7 = smov [#allocation11]  }
  0x1c   : > { %s2740_s30 = scalar_select %p2418_p11, 1, 0 }
  0x1d   : > { %p1926_p12 = pneg %p2418_p11  ;;  %s164_s8 = sshll.u32 %s2307_s7, 4  ;;  %s2430_s8 = int_to_ptr.vmem [resolvable:$true] %s164_s8 }
  0x1e   : > { %s2742_s1 = sld [smem:[#allocation20_spill]] }
  0x1f   : > { %p2426_p13 = pnand %p1926_p12, %p2393_p1 }
  0x21   : > { %p2094_p2 = pneg %p2426_p13 }
  0x24   : > { %s2092_s11 = scalar_lea.hbm %s2742_s1, 5120 }
  0x25   : > { %p2093_p0 = scmp.ne.s32.totalorder %s2742_s1, %s2092_s11  ;;  %p2099_p6 = scmp.lt.u32.totalorder %s2092_s11, %s2742_s1 }
  0x27   : > { %p2095_p4 = pnand %p2094_p2, %p2093_p0 }
  0x29   : > { %p2096_p5 = pneg %p2095_p4 }
  0x2b   : > { %p2101_p8 = pnand %p2099_p6, %p2096_p5 }
  0x2d   : > { %2104 = shalt.err (!%p2101_p8)
}
  0x2e   : > { %s2105_s7 = scalar_lea.vmem %s152_s5, 5120  ;;  %p2113_p7 = scmp.lt.s32.totalorder %s152_s5, %s152_s5 }
  0x2f   : > { %p2106_p10 = scmp.ne.s32.totalorder %s152_s5, %s2105_s7  ;;  %p2114_p1 = scmp.lt.s32.totalorder %s2105_s7, %s2105_s7 }
  0x31   : > { %p2108_p12 = pnand %p2106_p10, %p2094_p2  ;;  %p2115_p3 = por %p2114_p1, %p2113_p7 }
  0x33   : > { %p2109_p9 = pneg %p2108_p12 }
  0x35   : > { %p2116_p11 = pnand %p2115_p3, %p2109_p9 }
  0x37   : > { %2119 = shalt.err (!%p2116_p11)
}
  0x38   : > { %s2308_s9 = smov 64   ;;  %s2309_s10 = smov 4  }
  0x39   : > { %1929 = dma.hbm_to_vmem [thread:$0]  (!%p2426_p13), %s2742_s1, 5120, %s152_s5, [#allocation10], %s2308_s9, %s2308_s9, %s2309_s10  }
  0x3a   : > { %s2743_s2 = sld [smem:[#allocation21_spill]] }
  0x40   : > { %s2120_s4 = scalar_lea.hbm %s2743_s2, 256 }
  0x41   : > { %p2121_p0 = scmp.ne.s32.totalorder %s2743_s2, %s2120_s4  ;;  %p2127_p7 = scmp.lt.u32.totalorder %s2120_s4, %s2743_s2 }
  0x43   : > { %p2123_p1 = pnand %p2121_p0, %p2094_p2 }
  0x45   : > { %p2124_p3 = pneg %p2123_p1 }
  0x47   : > { %p2129_p9 = pnand %p2127_p7, %p2124_p3 }
  0x49   : > { %2132 = shalt.err (!%p2129_p9)
}
  0x4a   : > { %s2133_s5 = scalar_lea.vmem %s2430_s8, 256  ;;  %p2141_p6 = scmp.lt.s32.totalorder %s2430_s8, %s2430_s8 }
  0x4b   : > { %p2134_p11 = scmp.ne.s32.totalorder %s2430_s8, %s2133_s5  ;;  %p2142_p8 = scmp.lt.s32.totalorder %s2133_s5, %s2133_s5 }
  0x4d   : > { %p2136_p4 = pnand %p2134_p11, %p2094_p2  ;;  %p2143_p10 = por %p2142_p8, %p2141_p6 }
  0x4f   : > { %p2137_p5 = pneg %p2136_p4 }
  0x51   : > { %p2144_p12 = pnand %p2143_p10, %p2137_p5 }
  0x53   : > { %2147 = shalt.err (!%p2144_p12)
}
  0x54   : > { %s2725_s12 = smov 128   ;;  %s2726_s26 = smov 8  }
  0x55   : > { %1932 = dma.hbm_to_vmem [thread:$0]  (!%p2426_p13), %s2743_s2, 256, %s2430_s8, [#allocation10], %s2725_s12, %s2725_s12, %s2726_s26  }
  0x56   : > { %s29_s10 = sadd.s32 1, %s2296_s20  ;;  %s32_s11 = sadd.s32 1, %s2300_s21 }
  0x57   : > { %p30_p2 = scmp.ge.s32.totalorder %s29_s10, 4  ;;  %p36_p0 = scmp.eq.s32.totalorder %s2300_s21, 0 }
  0x58   : > { %s43_s15 = sadd.s32 1, %s2284_s17  ;;  %p50_p1 = scmp.ne.s32.totalorder %s2284_s17, %s2280_s16 }
  0x59   : > { %s2770_s10 = smov (%p30_p2, %s29_s10), 0  ;;  %s2772_s11 = smov (!%p30_p2, %s32_s11), %s2300_s21 }
  0x5a   : > { %s37_s6 = scalar_select %p36_p0, %s2296_s20, 0 }
  0x5b   : > { %p34_p3 = scmp.ge.s32.totalorder %s2772_s11, 5  ;;  %p51_p7 = scmp.eq.s32.totalorder %s2304_s22, 0 }
  0x5c   : > { %p108_p9 = scmp.eq.s32.totalorder %s2300_s21, 4  ;;  %p1943_p13 = scmp.lt.s32.totalorder %s2304_s22, 20 }
  0x5d   : > { %s2774_s11 = smov (%p34_p3, %s2772_s11), 0  ;;  %p2497_p11 = por %p51_p7, %p50_p1 }
  0x5e   : > { %2744 = sst [smem:[#allocation19_spill]] %s2774_s11  ;;  %s178_s23 = sand.u32 1, %s2284_s17  }
  0x5f   : > { %p38_p4 = scmp.eq.s32.totalorder %s2774_s11, 0  ;;  %p110_p5 = scmp.eq.s32.totalorder %s2774_s11, 4 }
  0x60   : > { %s109_s24 = scalar_select %p108_p9, %s2296_s20, 0 }
  0x61   : > { %s39_s4 = scalar_select %p38_p4, %s2770_s10, 0 }
  0x62   : > { %s111_s7 = scalar_select %p110_p5, %s2770_s10, 0 }
  0x63   : > { %s40_s5 = ssub.s32 %s37_s6, %s39_s4  ;;  %s1566_s9 = sshll.u32 %s178_s23, 6 }
  0x64   : > { %p41_p6 = scmp.eq.s32.totalorder %s40_s5, 0  ;;  %s112_s29 = ssub.s32 %s109_s24, %s111_s7 }
  0x65   : > { %p113_p8 = scmp.eq.s32.totalorder %s112_s29, 0  ;;  %s2746_s26 = sadd.s32 1, %s2272_s14 }
  0x66   : > { %s2508_s12 = scalar_select %p41_p6, %s2284_s17, %s43_s15  }
  0x67   : > { %s2513_s1 = scalar_select %p113_p8, %s2272_s14, %s2746_s26  }
  0x68   : > { %s1647_s2 = sshll.u32 %s37_s6, 10  ;;  %s182_s4 = scalar_lea.vmem [#allocation6], %s1566_s9 }
  0x69   : > { %s2518_s11 = scalar_lea.hbm %s2714_s0, %s1647_s2  ;;  %s191_s5 = sshll.u32 %s182_s4, 4  ;;  %s2520_s5 = int_to_ptr.vmem [resolvable:$true] %s191_s5 }
  0x6a   : > { %p2526_p10 = pnand %p1943_p13, %p2497_p11  ;;  %s2530_s26 = scalar_lea.sflag [#allocation7], %s178_s23 }
  0x6b   : > { %s2148_s2 = scalar_lea.hbm %s2518_s11, 1024  ;;  %s2153_s6 = scalar_lea.hbm %s2714_s0, 4096 }
  0x6c   : > { %p2149_p12 = scmp.ne.s32.totalorder %s2518_s11, %s2148_s2  ;;  %p2150_p2 = pneg %p2526_p10 }
  0x6d   : > { %p2154_p3 = scmp.lt.u32.totalorder %s2518_s11, %s2714_s0  ;;  %p2155_p7 = scmp.lt.u32.totalorder %s2153_s6, %s2148_s2 }
  0x6e   : > { %p2151_p0 = pnand %p2150_p2, %p2149_p12  ;;  %p2157_p13 = scmp.lt.u32.totalorder %s2148_s2, %s2518_s11 }
  0x6f   : > { %p2156_p9 = por %p2155_p7, %p2154_p3 }
  0x70   : > { %p2152_p1 = pneg %p2151_p0 }
  0x71   : > { %p2158_p11 = por %p2157_p13, %p2156_p9 }
  0x73   : > { %p2159_p4 = pnand %p2158_p11, %p2152_p1 }
  0x75   : > { %2162 = shalt.err (!%p2159_p4)
}
  0x76   : > { %s2163_s23 = scalar_lea.vmem %s2520_s5, 1024  ;;  %s2312_s7 = smov [#allocation6]  }
  0x77   : > { %p2164_p5 = scmp.ne.s32.totalorder %s2520_s5, %s2163_s23  ;;  %s2168_s29 = sshll.u32 %s2312_s7, 4  ;;  %s2169_s29 = int_to_ptr.vmem [resolvable:$false] %s2168_s29 }
  0x78   : > { %s2170_s9 = scalar_lea.vmem %s2169_s29, 2048  ;;  %p2171_p12 = scmp.lt.s32.totalorder %s2520_s5, %s2169_s29 }
  0x79   : > { %p2166_p6 = pnand %p2164_p5, %p2150_p2  ;;  %p2172_p0 = scmp.lt.s32.totalorder %s2170_s9, %s2163_s23 }
  0x7b   : > { %p2167_p8 = pneg %p2166_p6  ;;  %p2173_p3 = por %p2172_p0, %p2171_p12 }
  0x7d   : > { %p2174_p7 = pnand %p2173_p3, %p2167_p8 }
  0x7f   : > { %2177 = shalt.err (!%p2174_p7)
}
  0x80   : > { %s2748_s4 = smov 8   ;;  %s2749_s2 = smov 128  }
  0x81   : > { %1936 = dma.hbm_to_vmem [thread:$0]  (!%p2526_p10), %s2518_s11, 1024, %s2520_s5, %s2530_s26, %s2749_s2, %s2749_s2, %s2748_s4  }
  0x82   : > { %p2750_p2 = scmp.ne.s32.totalorder %s2740_s30, 0 }
  0x83   : > { %s205_s3 = sand.u32 (!%p2750_p2), 1, %s2280_s16   ;;  %p2751_p1 = scmp.ne.s32.totalorder (!%p2750_p2), %s2736_s27, 0 }
  0x84   : > { %203 = sbr.rel (%p2750_p2) target bundleno = 1703 (0x6a7), region = 32  ;;  %s1570_s21 = sshll.u32 (!%p2750_p2), %s205_s3, 6 }
  0x85   : > { %s206_s6 = scalar_lea.sflag (!%p2750_p2), [#allocation7], %s205_s3  ;;  %s2564_s8 = scalar_lea.vmem (!%p2750_p2), [#allocation6], %s1570_s21 }
  0x8b   : > { %2251 = dma.done.wait (%p2751_p1), %s206_s6, 1024  }
  0x8c   : > { %2253 = vsyncadd (%p2751_p1), %s206_s6, 4294966272  ;;  %p2752_p9 = scmp.ne.s32.totalorder %s2735_s25, 0 }
  0x8e   : > { %2255 = dma.done.wait (%p2752_p9), [#allocation10], 5376  }
  0x8f   : > { %2257 = vsyncadd (%p2752_p9), [#allocation10], 4294961920  ;;  %s237_s30 = sand.u32 1, %s2268_s13   ;;  %p247_p10 = scmp.eq.s32.totalorder %s2292_s19, 0 }
  0x90   : > { %s1573_s11 = sshll.u32 %s237_s30, 6  ;;  %p248_p13 = scmp.eq.s32.totalorder %s2288_s18, 0 }
  0x91   : > { %s2579_s5 = scalar_lea.vmem [#allocation12], %s1573_s11 }
  0x92   : > { %p249_p11 = pnand %p248_p13, %p247_p10 }
  0x93   : > { %v2313_v0 = vmov (!%p249_p11), 0.0  }
  0x94   : > { %252 = sbr.rel (%p249_p11) target bundleno = 155 (0x9b), region = 48  ;;  %253 = vst [vmem:[#allocation3] sm:$0xf] (!%p249_p11), %v2313_v0  ;;  %254 = vst [vmem:[#allocation4] sm:$0xf] (!%p249_p11), %v2313_v0 }
  0x9b PF: > { %p1574_p4 = scmp.ne.s32.totalorder %s2292_s19, 0 }
  0x9c   : > { %v2044_v1 = vld [vmem:[#allocation9] sm:$0xff] (!%p1574_p4)   ;;  %v2045_v2 = vld [vmem:[#allocation9 + $0x8] sm:$0xff] (!%p1574_p4)   ;;  %v2046_v3 = vld [vmem:[#allocation9 + $0x10] sm:$0xff] (!%p1574_p4)   ;;  %s1648_s25 = sshll.u32 (!%p1574_p4), %s2288_s18, 5 }
  0x9d   : > { %257 = sbr.rel (%p1574_p4) target bundleno = 435 (0x1b3), region = 52  ;;  %1714 = vmatprep.subr.bf16.mxu0 (!%p1574_p4), %v2044_v1  ;;  %1834 = vmatprep.subr.bf16.mxu1 (!%p1574_p4), %v2044_v1  ;;  %v2047_v4 = vld [vmem:[#allocation9 + $0x18] sm:$0xff] (!%p1574_p4)   ;;  %v258_v5 = vld [vmem:[%s2564_s8] sm:$0xff] (!%p1574_p4)  ;;  %v259_v6 = vld [vmem:[%s2564_s8 + $0x8] sm:$0xff] (!%p1574_p4)  ;;  %s445_s27 = scalar_lea.vmem (!%p1574_p4), [#allocation2], %s1648_s25 }
  0x9e   : > { %1715 = vmatpush3.bf16.msra.mxu0 (!%p1574_p4), %v2044_v1  ;;  %1842 = vmatpush3.bf16.msra.mxu1 (!%p1574_p4), %v2044_v1  ;;  %v266_v7 = vpack.c.bf16 (!%p1574_p4), %v259_v6, %v258_v5  ;;  %v262_v8 = vld [vmem:[%s2564_s8 + $0x20] sm:$0xff] (!%p1574_p4)  ;;  %v263_v9 = vld [vmem:[%s2564_s8 + $0x28] sm:$0xff] (!%p1574_p4)  ;;  %v2050_v13 = vld [vmem:[#allocation9 + $0x30] sm:$0xff] (!%p1574_p4)  }
  0x9f   : > { %1716 = vmatprep.subr.bf16.mxu0 (!%p1574_p4), %v2045_v2  ;;  %1835 = vmatprep.subr.bf16.mxu1 (!%p1574_p4), %v2045_v2  ;;  %v268_v10 = vpack.c.bf16 (!%p1574_p4), %v263_v9, %v262_v8  ;;  %v2048_v11 = vld [vmem:[#allocation9 + $0x20] sm:$0xff] (!%p1574_p4)   ;;  %v2049_v12 = vld [vmem:[#allocation9 + $0x28] sm:$0xff] (!%p1574_p4)   ;;  %v2051_v14 = vld [vmem:[#allocation9 + $0x38] sm:$0xff] (!%p1574_p4)  }
  0xa0   : > { %1730 = vmatprep.mubr.bf16.mxu0 (!%p1574_p4), %v266_v7  ;;  %v260_v15 = vld [vmem:[%s2564_s8 + $0x10] sm:$0xff] (!%p1574_p4)  ;;  %v261_v16 = vld [vmem:[%s2564_s8 + $0x18] sm:$0xff] (!%p1574_p4) }
  0xa1   : > { %1734 = vmatprep.mubr.bf16.mxu1 (!%p1574_p4), %v268_v10  ;;  %v264_v17 = vld [vmem:[%s2564_s8 + $0x30] sm:$0xff] (!%p1574_p4)  ;;  %v265_v18 = vld [vmem:[%s2564_s8 + $0x38] sm:$0xff] (!%p1574_p4)  ;;  %v267_v19 = vpack.c.bf16 (!%p1574_p4), %v261_v16, %v260_v15 }
  0xa2   : > { %1717 = vmatpush3.bf16.msra.mxu0 (!%p1574_p4), %v2045_v2  ;;  %1843 = vmatpush3.bf16.msra.mxu1 (!%p1574_p4), %v2045_v2  ;;  %v269_v20 = vpack.c.bf16 (!%p1574_p4), %v265_v18, %v264_v17  ;;  %v399_v0 = vld [vmem:[#allocation3] sm:$0x1] (!%p1574_p4) }
  0xa3   : > { %1718 = vmatprep.subr.bf16.mxu0 (!%p1574_p4), %v2046_v3  ;;  %1836 = vmatprep.subr.bf16.mxu1 (!%p1574_p4), %v2046_v3 }
  0xa6   : > { %1719 = vmatpush3.bf16.msra.mxu0 %v2046_v3  ;;  %1844 = vmatpush3.bf16.msra.mxu1 %v2046_v3  ;;  %v415_v3 = vld [vmem:[#allocation4] sm:$0x1] }
  0xa7   : > { %1720 = vmatprep.subr.bf16.mxu0 %v2047_v4  ;;  %1837 = vmatprep.subr.bf16.mxu1 %v2047_v4 }
  0xaa   : > { %1721 = vmatpush3.bf16.msra.mxu0 %v2047_v4  ;;  %1845 = vmatpush3.bf16.msra.mxu1 %v2047_v4 }
  0xab   : > { %1722 = vmatprep.subr.bf16.mxu0 %v2048_v11  ;;  %1838 = vmatprep.subr.bf16.mxu1 %v2048_v11 }
  0xae   : > { %1723 = vmatpush3.bf16.msra.mxu0 %v2048_v11  ;;  %1846 = vmatpush3.bf16.msra.mxu1 %v2048_v11 }
  0xaf   : > { %1724 = vmatprep.subr.bf16.mxu0 %v2049_v12  ;;  %1839 = vmatprep.subr.bf16.mxu1 %v2049_v12 }
  0xb2   : > { %1725 = vmatpush3.bf16.msra.mxu0 %v2049_v12  ;;  %1847 = vmatpush3.bf16.msra.mxu1 %v2049_v12 }
  0xb3   : > { %1726 = vmatprep.subr.bf16.mxu0 %v2050_v13  ;;  %1840 = vmatprep.subr.bf16.mxu1 %v2050_v13 }
  0xb6   : > { %1727 = vmatpush3.bf16.msra.mxu0 %v2050_v13  ;;  %1848 = vmatpush3.bf16.msra.mxu1 %v2050_v13 }
  0xb7   : > { %1728 = vmatprep.subr.bf16.mxu0 %v2051_v14  ;;  %1841 = vmatprep.subr.bf16.mxu1 %v2051_v14 }
  0xba   : > { %1729 = vmatpush3.bf16.msra.mxu0 %v2051_v14  ;;  %1849 = vmatpush3.bf16.msra.mxu1 %v2051_v14 }
  0xbd   : > { %1731 = vmatmul.mubr.bf16.vlgmr.msra.gmra.mrb[0].mxu0 %v267_v19  ;;  %1735 = vmatmul.mubr.bf16.vlgmr.msra.gmra.mrb[0].mxu1 %v269_v20 }
 0x190   : > { %v1732_v21 = vpop.f32.mrb[0].mxu0  ;;  %v1736_v22 = vpop.f32.mrb[0].mxu1 }
 0x191   : > { %v368_v23 = vpop.f32.mrb[1].mxu0  ;;  %v384_v24 = vpop.f32.mrb[1].mxu1  ;;  %v418_v36 = vmul.f32 %v1732_v21, %v1732_v21  ;;  %v422_v48 = vmul.f32 %v1736_v22, %v1736_v22 }
 0x192   : > { %v1733_v25 = vpop.f32.mrb[2].mxu0  ;;  %v1737_v26 = vpop.f32.mrb[2].mxu1  ;;  %v416_v31 = vmul.f32 %v368_v23, %v368_v23  ;;  %v420_v42 = vmul.f32 %v384_v24, %v384_v24 }
 0x193   : > { %v440_v27 = vpack.c.bf16 %v1733_v25, %v1732_v21  ;;  %v371_v28 = vpop.f32.mrb[3].mxu0  ;;  %v442_v29 = vpack.c.bf16 %v1737_v26, %v1736_v22  ;;  %v387_v30 = vpop.f32.mrb[3].mxu1  ;;  %v419_v39 = vmul.f32 %v1733_v25, %v1733_v25  ;;  %v423_v51 = vmul.f32 %v1737_v26, %v1737_v26 }
 0x194   : > { %v400_v32 = vadd.f32 %v371_v28, %v368_v23  ;;  %v417_v33 = vmul.f32 %v371_v28, %v371_v28  ;;  %v439_v34 = vpack.c.bf16 %v371_v28, %v368_v23  ;;  %v441_v35 = vpack.c.bf16 %v387_v30, %v384_v24 }
 0x195   : > { %447 = vst [vmem:[%s445_s27 + $0x8] sm:$0xff] %v440_v27  ;;  %449 = vst [vmem:[%s445_s27 + $0x18] sm:$0xff] %v442_v29  ;;  %v421_v47 = vmul.f32 %v387_v30, %v387_v30 }
 0x196   : > { %v401_v37 = vadd.f32 %v1732_v21, %v400_v32  ;;  %v424_v38 = vadd.f32 %v417_v33, %v416_v31  ;;  %446 = vst [vmem:[%s445_s27] sm:$0xff] %v439_v34  ;;  %448 = vst [vmem:[%s445_s27 + $0x10] sm:$0xff] %v441_v35 }
 0x198   : > { %v425_v40 = vadd.f32 %v424_v38, %v418_v36  ;;  %v402_v41 = vadd.f32 %v1733_v25, %v401_v37 }
 0x19a   : > { %v403_v43 = vadd.f32 %v402_v41, %v384_v24  ;;  %v426_v44 = vadd.f32 %v425_v40, %v419_v39 }
 0x19c   : > { %v427_v45 = vadd.f32 %v426_v44, %v420_v42  ;;  %v404_v46 = vadd.f32 %v403_v43, %v387_v30 }
 0x19e   : > { %v405_v49 = vadd.f32 %v1736_v22, %v404_v46  ;;  %v428_v50 = vadd.f32 %v427_v45, %v421_v47 }
 0x1a0   : > { %v406_v52 = vadd.f32 %v1737_v26, %v405_v49  ;;  %v429_v53 = vadd.f32 %v428_v50, %v422_v48 }
 0x1a2   : > { %v407_v54 = vrot.slane %v406_v52, 4  ;;  %v430_v55 = vadd.f32 %v429_v53, %v423_v51 }
 0x1a4   : > { %v408_v56 = vadd.f32 %v407_v54, %v406_v52  ;;  %v431_v57 = vrot.slane %v430_v55, 4 }
 0x1a6   : > { %v409_v58 = vrot.slane %v408_v56, 2  ;;  %v432_v59 = vadd.f32 %v431_v57, %v430_v55 }
 0x1a8   : > { %v410_v60 = vadd.f32 %v409_v58, %v408_v56  ;;  %v433_v61 = vrot.slane %v432_v59, 2 }
 0x1aa   : > { %v411_v62 = vrot.slane %v410_v60, 1  ;;  %v434_v63 = vadd.f32 %v433_v61, %v432_v59 }
 0x1ac   : > { %v412_v1 = vadd.f32 %v411_v62, %v410_v60  ;;  %v435_v2 = vrot.slane %v434_v63, 1 }
 0x1ae   : > { %v413_v4 = vadd.f32 %v412_v1, %v399_v0  ;;  %v436_v5 = vadd.f32 %v435_v2, %v434_v63 }
 0x1b0   : > { %414 = vst [vmem:[#allocation3] sm:$0x1] %v413_v4  ;;  %v437_v6 = vadd.f32 %v436_v5, %v415_v3 }
 0x1b2   : > { %438 = vst [vmem:[#allocation4] sm:$0x1] %v437_v6 }
 0x1b3 PF: > { %p1585_p5 = scmp.ne.s32.totalorder %s2292_s19, 1 }
 0x1b4   : > { %p1586_p6 = scmp.ne.s32.totalorder (!%p1585_p5), %s2288_s18, 0 }
 0x1b5   : > { %453 = sbr.rel (%p1585_p5) target bundleno = 752 (0x2f0), region = 56 }
 0x1bc   : > { %456 = sbr.rel (%p1586_p6) target bundleno = 473 (0x1d9), region = 60  ;;  %v457_v7 = vld [vmem:[#allocation3] sm:$0x1] (!%p1586_p6)  ;;  %v459_v8 = vld [vmem:[#allocation4] sm:$0x1] (!%p1586_p6) }
 0x1bd   : > { %v458_v9 = vmul.f32 (!%p1586_p6), 0.00390625, %v457_v7  ;;  %v460_v10 = vmul.f32 (!%p1586_p6), 0.00390625, %v459_v8  ;;  %v464_v15 = vld [vmem:[#allocation11] sm:$0x1] (!%p1586_p6)  ;;  %v469_v18 = vld [vmem:[#allocation11 + $0x1] sm:$0x1] (!%p1586_p6) }
 0x1bf   : > { %v461_v11 = vmul.f32 (!%p1586_p6), %v458_v9, %v458_v9 }
 0x1c1   : > { %v462_v12 = vsub.f32 (!%p1586_p6), %v460_v10, %v461_v11 }
 0x1c3   : > { %v463_v13 = vmax.f32 %v462_v12, 0.0 }
 0x1c5   : > { %v465_v14 = vadd.f32 1e-05, %v463_v13 }
 0x1c7   : > { %2052 = vrsqrt.f32 %v465_v14 }
 0x1d1   : > { %v2053_v16 = vpop.eup %2052 }
 0x1d2   : > { %v467_v17 = vmul.f32 %v2053_v16, %v464_v15 }
 0x1d4   : > { %468 = vst [vmem:[#allocation5] sm:$0x1] %v467_v17  ;;  %v470_v19 = vmul.f32 %v467_v17, %v458_v9 }
 0x1d6   : > { %v471_v20 = vsub.f32 %v469_v18, %v470_v19 }
 0x1d8   : > { %472 = vst [vmem:[#allocation5 + $0x1] sm:$0x1] %v471_v20 }
 0x1d9 PF: > { %v2054_v21 = vld [vmem:[#allocation9 + $0x40] sm:$0xff]   ;;  %v2055_v22 = vld [vmem:[#allocation9 + $0x48] sm:$0xff]   ;;  %s1649_s15 = sshll.u32 %s2288_s18, 5  ;;  %v2056_v23 = vld [vmem:[#allocation9 + $0x50] sm:$0xff]  }
 0x1da   : > { %1738 = vmatprep.subr.bf16.mxu0 %v2054_v21  ;;  %1850 = vmatprep.subr.bf16.mxu1 %v2054_v21  ;;  %v2057_v24 = vld [vmem:[#allocation9 + $0x58] sm:$0xff]   ;;  %s2594_s26 = scalar_lea.vmem [#allocation2], %s1649_s15  ;;  %v2058_v37 = vld [vmem:[#allocation9 + $0x60] sm:$0xff]   ;;  %v2059_v50 = vld [vmem:[#allocation9 + $0x68] sm:$0xff]  }
 0x1db   : > { %1739 = vmatpush3.bf16.msra.mxu0 %v2054_v21  ;;  %1858 = vmatpush3.bf16.msra.mxu1 %v2054_v21  ;;  %v476_v25 = vld [vmem:[%s2594_s26] sm:$0xff]  ;;  %v1589_v26 = vld [vmem:[#allocation5] ss:$0 sm:$0xff]  ;;  %v478_v29 = vld [vmem:[%s2594_s26 + $0x10] sm:$0xff] }
 0x1dc   : > { %1740 = vmatprep.subr.bf16.mxu0 %v2055_v22  ;;  %1851 = vmatprep.subr.bf16.mxu1 %v2055_v22  ;;  %v480_v27 = vunpack.c.l.bf16 %v476_v25  ;;  %v481_v28 = vunpack.c.h.bf16 %v476_v25  ;;  %v477_v31 = vld [vmem:[%s2594_s26 + $0x8] sm:$0xff]  ;;  %v484_v32 = vunpack.c.l.bf16 %v478_v29  ;;  %v485_v33 = vunpack.c.h.bf16 %v478_v29  ;;  %v479_v36 = vld [vmem:[%s2594_s26 + $0x18] sm:$0xff] }
 0x1dd   : > { %v482_v41 = vunpack.c.l.bf16 %v477_v31  ;;  %v483_v43 = vunpack.c.h.bf16 %v477_v31  ;;  %v486_v45 = vunpack.c.l.bf16 %v479_v36  ;;  %v487_v46 = vunpack.c.h.bf16 %v479_v36  ;;  %v2060_v59 = vld [vmem:[#allocation9 + $0x70] sm:$0xff]   ;;  %v2061_v0 = vld [vmem:[#allocation9 + $0x78] sm:$0xff]  }
 0x1de   : > { %v493_v34 = vmul.f32 %v1589_v26, %v480_v27  ;;  %v494_v35 = vmul.f32 %v1589_v26, %v481_v28  ;;  %v497_v38 = vmul.f32 %v1589_v26, %v484_v32  ;;  %v498_v42 = vmul.f32 %v1589_v26, %v485_v33 }
 0x1df   : > { %1741 = vmatpush3.bf16.msra.mxu0 %v2055_v22  ;;  %1859 = vmatpush3.bf16.msra.mxu1 %v2055_v22  ;;  %v1590_v30 = vld [vmem:[#allocation5 + $0x1] ss:$0 sm:$0xff]  ;;  %v495_v54 = vmul.f32 %v1589_v26, %v482_v41  ;;  %v496_v55 = vmul.f32 %v1589_v26, %v483_v43  ;;  %v499_v56 = vmul.f32 %v1589_v26, %v486_v45 }
 0x1e0   : > { %1742 = vmatprep.subr.bf16.mxu0 %v2056_v23  ;;  %1852 = vmatprep.subr.bf16.mxu1 %v2056_v23  ;;  %v506_v39 = vadd.f32 %v1590_v30, %v493_v34  ;;  %v507_v40 = vadd.f32 %v1590_v30, %v494_v35  ;;  %v510_v44 = vadd.f32 %v1590_v30, %v497_v38 }
 0x1e1   : > { %v511_v49 = vadd.f32 %v1590_v30, %v498_v42  ;;  %v500_v57 = vmul.f32 %v1589_v26, %v487_v46  ;;  %v508_v60 = vadd.f32 %v1590_v30, %v495_v54  ;;  %v509_v61 = vadd.f32 %v1590_v30, %v496_v55 }
 0x1e2   : > { %v514_v47 = vmax.f32 %v506_v39, 0.0  ;;  %v515_v48 = vmax.f32 %v507_v40, 0.0  ;;  %v518_v51 = vmax.f32 %v510_v44, 0.0  ;;  %v512_v62 = vadd.f32 %v1590_v30, %v499_v56 }
 0x1e3   : > { %1743 = vmatpush3.bf16.msra.mxu0 %v2056_v23  ;;  %1860 = vmatpush3.bf16.msra.mxu1 %v2056_v23  ;;  %v519_v53 = vmax.f32 %v511_v49, 0.0  ;;  %v513_v63 = vadd.f32 %v1590_v30, %v500_v57  ;;  %v516_v1 = vmax.f32 %v508_v60, 0.0  ;;  %v517_v2 = vmax.f32 %v509_v61, 0.0 }
 0x1e4   : > { %1744 = vmatprep.subr.bf16.mxu0 %v2057_v24  ;;  %1853 = vmatprep.subr.bf16.mxu1 %v2057_v24  ;;  %v522_v52 = vpack.c.bf16 %v515_v48, %v514_v47  ;;  %v520_v3 = vmax.f32 %v512_v62, 0.0 }
 0x1e5   : > { %v524_v58 = vpack.c.bf16 %v519_v53, %v518_v51  ;;  %v521_v4 = vmax.f32 %v513_v63, 0.0  ;;  %v523_v5 = vpack.c.bf16 %v517_v2, %v516_v1  ;;  %v672_v53 = vld [vmem:[#allocation4 + $0x1] sm:$0x1] }
 0x1e6   : > { %1754 = vmatprep.mubr.bf16.mxu0 %v522_v52 }
 0x1e7   : > { %1745 = vmatpush3.bf16.msra.mxu0 %v2057_v24  ;;  %1861 = vmatpush3.bf16.msra.mxu1 %v2057_v24  ;;  %v525_v6 = vpack.c.bf16 %v521_v4, %v520_v3 }
 0x1e8   : > { %1746 = vmatprep.subr.bf16.mxu0 %v2058_v37  ;;  %1854 = vmatprep.subr.bf16.mxu1 %v2058_v37 }
 0x1e9   : > { %1758 = vmatprep.mubr.bf16.mxu1 %v524_v58 }
 0x1eb   : > { %1747 = vmatpush3.bf16.msra.mxu0 %v2058_v37  ;;  %1862 = vmatpush3.bf16.msra.mxu1 %v2058_v37 }
 0x1ec   : > { %1748 = vmatprep.subr.bf16.mxu0 %v2059_v50  ;;  %1855 = vmatprep.subr.bf16.mxu1 %v2059_v50 }
 0x1ef   : > { %1749 = vmatpush3.bf16.msra.mxu0 %v2059_v50  ;;  %1863 = vmatpush3.bf16.msra.mxu1 %v2059_v50  ;;  %v656_v50 = vld [vmem:[#allocation3 + $0x1] sm:$0x1] }
 0x1f0   : > { %1750 = vmatprep.subr.bf16.mxu0 %v2060_v59  ;;  %1856 = vmatprep.subr.bf16.mxu1 %v2060_v59 }
 0x1f3   : > { %1751 = vmatpush3.bf16.msra.mxu0 %v2060_v59  ;;  %1864 = vmatpush3.bf16.msra.mxu1 %v2060_v59 }
 0x1f4   : > { %1752 = vmatprep.subr.bf16.mxu0 %v2061_v0  ;;  %1857 = vmatprep.subr.bf16.mxu1 %v2061_v0 }
 0x1f7   : > { %1753 = vmatpush3.bf16.msra.mxu0 %v2061_v0  ;;  %1865 = vmatpush3.bf16.msra.mxu1 %v2061_v0 }
 0x1fa   : > { %1755 = vmatmul.mubr.bf16.vlgmr.msra.gmra.mrb[0].mxu0 %v523_v5  ;;  %1759 = vmatmul.mubr.bf16.vlgmr.msra.gmra.mrb[0].mxu1 %v525_v6 }
 0x2cd   : > { %v1756_v7 = vpop.f32.mrb[0].mxu0  ;;  %v1760_v8 = vpop.f32.mrb[0].mxu1 }
 0x2ce   : > { %v625_v9 = vpop.f32.mrb[1].mxu0  ;;  %v641_v10 = vpop.f32.mrb[1].mxu1  ;;  %v675_v22 = vmul.f32 %v1756_v7, %v1756_v7  ;;  %v679_v34 = vmul.f32 %v1760_v8, %v1760_v8 }
 0x2cf   : > { %v1757_v11 = vpop.f32.mrb[2].mxu0  ;;  %v1761_v12 = vpop.f32.mrb[2].mxu1  ;;  %v673_v17 = vmul.f32 %v625_v9, %v625_v9  ;;  %v677_v28 = vmul.f32 %v641_v10, %v641_v10 }
 0x2d0   : > { %v697_v13 = vpack.c.bf16 %v1757_v11, %v1756_v7  ;;  %v628_v14 = vpop.f32.mrb[3].mxu0  ;;  %v699_v15 = vpack.c.bf16 %v1761_v12, %v1760_v8  ;;  %v644_v16 = vpop.f32.mrb[3].mxu1  ;;  %v676_v25 = vmul.f32 %v1757_v11, %v1757_v11  ;;  %v680_v37 = vmul.f32 %v1761_v12, %v1761_v12 }
 0x2d1   : > { %v657_v18 = vadd.f32 %v628_v14, %v625_v9  ;;  %v674_v19 = vmul.f32 %v628_v14, %v628_v14  ;;  %v696_v20 = vpack.c.bf16 %v628_v14, %v625_v9  ;;  %v698_v21 = vpack.c.bf16 %v644_v16, %v641_v10 }
 0x2d2   : > { %701 = vst [vmem:[%s2594_s26 + $0x8] sm:$0xff] %v697_v13  ;;  %703 = vst [vmem:[%s2594_s26 + $0x18] sm:$0xff] %v699_v15  ;;  %v678_v33 = vmul.f32 %v644_v16, %v644_v16 }
 0x2d3   : > { %v658_v23 = vadd.f32 %v1756_v7, %v657_v18  ;;  %v681_v24 = vadd.f32 %v674_v19, %v673_v17  ;;  %700 = vst [vmem:[%s2594_s26] sm:$0xff] %v696_v20  ;;  %702 = vst [vmem:[%s2594_s26 + $0x10] sm:$0xff] %v698_v21 }
 0x2d5   : > { %v682_v26 = vadd.f32 %v681_v24, %v675_v22  ;;  %v659_v27 = vadd.f32 %v1757_v11, %v658_v23 }
 0x2d7   : > { %v660_v29 = vadd.f32 %v659_v27, %v641_v10  ;;  %v683_v30 = vadd.f32 %v682_v26, %v676_v25 }
 0x2d9   : > { %v684_v31 = vadd.f32 %v683_v30, %v677_v28  ;;  %v661_v32 = vadd.f32 %v660_v29, %v644_v16 }
 0x2db   : > { %v662_v35 = vadd.f32 %v1760_v8, %v661_v32  ;;  %v685_v36 = vadd.f32 %v684_v31, %v678_v33 }
 0x2dd   : > { %v663_v38 = vadd.f32 %v1761_v12, %v662_v35  ;;  %v686_v39 = vadd.f32 %v685_v36, %v679_v34 }
 0x2df   : > { %v664_v40 = vrot.slane %v663_v38, 4  ;;  %v687_v41 = vadd.f32 %v686_v39, %v680_v37 }
 0x2e1   : > { %v665_v42 = vadd.f32 %v664_v40, %v663_v38  ;;  %v688_v43 = vrot.slane %v687_v41, 4 }
 0x2e3   : > { %v666_v44 = vrot.slane %v665_v42, 2  ;;  %v689_v45 = vadd.f32 %v688_v43, %v687_v41 }
 0x2e5   : > { %v667_v46 = vadd.f32 %v666_v44, %v665_v42  ;;  %v690_v47 = vrot.slane %v689_v45, 2 }
 0x2e7   : > { %v668_v48 = vrot.slane %v667_v46, 1  ;;  %v691_v49 = vadd.f32 %v690_v47, %v689_v45 }
 0x2e9   : > { %v669_v51 = vadd.f32 %v668_v48, %v667_v46  ;;  %v692_v52 = vrot.slane %v691_v49, 1 }
 0x2eb   : > { %v670_v54 = vadd.f32 %v669_v51, %v656_v50  ;;  %v693_v55 = vadd.f32 %v692_v52, %v691_v49 }
 0x2ed   : > { %671 = vst [vmem:[#allocation3 + $0x1] sm:$0x1] %v670_v54  ;;  %v694_v56 = vadd.f32 %v693_v55, %v672_v53 }
 0x2ef   : > { %695 = vst [vmem:[#allocation4 + $0x1] sm:$0x1] %v694_v56 }
 0x2f0 PF: > { %p1599_p8 = scmp.ne.s32.totalorder %s2292_s19, 2 }
 0x2f1   : > { %p1600_p12 = scmp.ne.s32.totalorder (!%p1599_p8), %s2288_s18, 0 }
 0x2f2   : > { %707 = sbr.rel (%p1599_p8) target bundleno = 1069 (0x42d), region = 64 }
 0x2f9   : > { %710 = sbr.rel (%p1600_p12) target bundleno = 790 (0x316), region = 68  ;;  %v711_v57 = vld [vmem:[#allocation3 + $0x1] sm:$0x1] (!%p1600_p12)  ;;  %v713_v58 = vld [vmem:[#allocation4 + $0x1] sm:$0x1] (!%p1600_p12) }
 0x2fa   : > { %v712_v59 = vmul.f32 (!%p1600_p12), 0.00390625, %v711_v57  ;;  %v714_v60 = vmul.f32 (!%p1600_p12), 0.00390625, %v713_v58  ;;  %v718_v1 = vld [vmem:[#allocation11 + $0x2] sm:$0x1] (!%p1600_p12)  ;;  %v723_v4 = vld [vmem:[#allocation11 + $0x3] sm:$0x1] (!%p1600_p12) }
 0x2fc   : > { %v715_v61 = vmul.f32 (!%p1600_p12), %v712_v59, %v712_v59 }
 0x2fe   : > { %v716_v62 = vsub.f32 (!%p1600_p12), %v714_v60, %v715_v61 }
 0x300   : > { %v717_v63 = vmax.f32 %v716_v62, 0.0 }
 0x302   : > { %v719_v0 = vadd.f32 1e-05, %v717_v63 }
 0x304   : > { %2062 = vrsqrt.f32 %v719_v0 }
 0x30e   : > { %v2063_v2 = vpop.eup %2062 }
 0x30f   : > { %v721_v3 = vmul.f32 %v2063_v2, %v718_v1 }
 0x311   : > { %722 = vst [vmem:[#allocation5] sm:$0x1] %v721_v3  ;;  %v724_v5 = vmul.f32 %v721_v3, %v712_v59 }
 0x313   : > { %v725_v6 = vsub.f32 %v723_v4, %v724_v5 }
 0x315   : > { %726 = vst [vmem:[#allocation5 + $0x1] sm:$0x1] %v725_v6 }
 0x316 PF: > { %v2064_v7 = vld [vmem:[#allocation9 + $0x80] sm:$0xff]   ;;  %v2065_v8 = vld [vmem:[#allocation9 + $0x88] sm:$0xff]   ;;  %s1650_s24 = sshll.u32 %s2288_s18, 5  ;;  %v2066_v9 = vld [vmem:[#allocation9 + $0x90] sm:$0xff]  }
 0x317   : > { %1762 = vmatprep.subr.bf16.mxu0 %v2064_v7  ;;  %1866 = vmatprep.subr.bf16.mxu1 %v2064_v7  ;;  %v2067_v10 = vld [vmem:[#allocation9 + $0x98] sm:$0xff]   ;;  %s2607_s23 = scalar_lea.vmem [#allocation2], %s1650_s24  ;;  %v2068_v23 = vld [vmem:[#allocation9 + $0xa0] sm:$0xff]   ;;  %v2069_v36 = vld [vmem:[#allocation9 + $0xa8] sm:$0xff]  }
 0x318   : > { %1763 = vmatpush3.bf16.msra.mxu0 %v2064_v7  ;;  %1874 = vmatpush3.bf16.msra.mxu1 %v2064_v7  ;;  %v730_v11 = vld [vmem:[%s2607_s23] sm:$0xff]  ;;  %v1603_v12 = vld [vmem:[#allocation5] ss:$0 sm:$0xff]  ;;  %v732_v15 = vld [vmem:[%s2607_s23 + $0x10] sm:$0xff] }
 0x319   : > { %1764 = vmatprep.subr.bf16.mxu0 %v2065_v8  ;;  %1867 = vmatprep.subr.bf16.mxu1 %v2065_v8  ;;  %v734_v13 = vunpack.c.l.bf16 %v730_v11  ;;  %v735_v14 = vunpack.c.h.bf16 %v730_v11  ;;  %v731_v17 = vld [vmem:[%s2607_s23 + $0x8] sm:$0xff]  ;;  %v738_v18 = vunpack.c.l.bf16 %v732_v15  ;;  %v739_v19 = vunpack.c.h.bf16 %v732_v15  ;;  %v733_v22 = vld [vmem:[%s2607_s23 + $0x18] sm:$0xff] }
 0x31a   : > { %v736_v27 = vunpack.c.l.bf16 %v731_v17  ;;  %v737_v29 = vunpack.c.h.bf16 %v731_v17  ;;  %v740_v31 = vunpack.c.l.bf16 %v733_v22  ;;  %v741_v32 = vunpack.c.h.bf16 %v733_v22  ;;  %v2070_v45 = vld [vmem:[#allocation9 + $0xb0] sm:$0xff]   ;;  %v2071_v50 = vld [vmem:[#allocation9 + $0xb8] sm:$0xff]  }
 0x31b   : > { %v747_v20 = vmul.f32 %v1603_v12, %v734_v13  ;;  %v748_v21 = vmul.f32 %v1603_v12, %v735_v14  ;;  %v751_v24 = vmul.f32 %v1603_v12, %v738_v18  ;;  %v752_v28 = vmul.f32 %v1603_v12, %v739_v19 }
 0x31c   : > { %1765 = vmatpush3.bf16.msra.mxu0 %v2065_v8  ;;  %1875 = vmatpush3.bf16.msra.mxu1 %v2065_v8  ;;  %v1604_v16 = vld [vmem:[#allocation5 + $0x1] ss:$0 sm:$0xff]  ;;  %v749_v40 = vmul.f32 %v1603_v12, %v736_v27  ;;  %v750_v41 = vmul.f32 %v1603_v12, %v737_v29  ;;  %v753_v42 = vmul.f32 %v1603_v12, %v740_v31 }
 0x31d   : > { %1766 = vmatprep.subr.bf16.mxu0 %v2066_v9  ;;  %1868 = vmatprep.subr.bf16.mxu1 %v2066_v9  ;;  %v760_v25 = vadd.f32 %v1604_v16, %v747_v20  ;;  %v761_v26 = vadd.f32 %v1604_v16, %v748_v21  ;;  %v764_v30 = vadd.f32 %v1604_v16, %v751_v24 }
 0x31e   : > { %v765_v35 = vadd.f32 %v1604_v16, %v752_v28  ;;  %v754_v43 = vmul.f32 %v1603_v12, %v741_v32  ;;  %v762_v46 = vadd.f32 %v1604_v16, %v749_v40  ;;  %v763_v47 = vadd.f32 %v1604_v16, %v750_v41 }
 0x31f   : > { %v768_v33 = vmax.f32 %v760_v25, 0.0  ;;  %v769_v34 = vmax.f32 %v761_v26, 0.0  ;;  %v772_v37 = vmax.f32 %v764_v30, 0.0  ;;  %v766_v48 = vadd.f32 %v1604_v16, %v753_v42 }
 0x320   : > { %1767 = vmatpush3.bf16.msra.mxu0 %v2066_v9  ;;  %1876 = vmatpush3.bf16.msra.mxu1 %v2066_v9  ;;  %v773_v39 = vmax.f32 %v765_v35, 0.0  ;;  %v767_v49 = vadd.f32 %v1604_v16, %v754_v43  ;;  %v770_v51 = vmax.f32 %v762_v46, 0.0  ;;  %v771_v52 = vmax.f32 %v763_v47, 0.0 }
 0x321   : > { %1768 = vmatprep.subr.bf16.mxu0 %v2067_v10  ;;  %1869 = vmatprep.subr.bf16.mxu1 %v2067_v10  ;;  %v776_v38 = vpack.c.bf16 %v769_v34, %v768_v33  ;;  %v774_v53 = vmax.f32 %v766_v48, 0.0 }
 0x322   : > { %v778_v44 = vpack.c.bf16 %v773_v39, %v772_v37  ;;  %v775_v54 = vmax.f32 %v767_v49, 0.0  ;;  %v777_v55 = vpack.c.bf16 %v771_v52, %v770_v51  ;;  %v926_v39 = vld [vmem:[#allocation4 + $0x2] sm:$0x1] }
 0x323   : > { %1778 = vmatprep.mubr.bf16.mxu0 %v776_v38 }
 0x324   : > { %1769 = vmatpush3.bf16.msra.mxu0 %v2067_v10  ;;  %1877 = vmatpush3.bf16.msra.mxu1 %v2067_v10  ;;  %v779_v56 = vpack.c.bf16 %v775_v54, %v774_v53 }
 0x325   : > { %1770 = vmatprep.subr.bf16.mxu0 %v2068_v23  ;;  %1870 = vmatprep.subr.bf16.mxu1 %v2068_v23 }
 0x326   : > { %1782 = vmatprep.mubr.bf16.mxu1 %v778_v44 }
 0x328   : > { %1771 = vmatpush3.bf16.msra.mxu0 %v2068_v23  ;;  %1878 = vmatpush3.bf16.msra.mxu1 %v2068_v23 }
 0x329   : > { %1772 = vmatprep.subr.bf16.mxu0 %v2069_v36  ;;  %1871 = vmatprep.subr.bf16.mxu1 %v2069_v36 }
 0x32c   : > { %1773 = vmatpush3.bf16.msra.mxu0 %v2069_v36  ;;  %1879 = vmatpush3.bf16.msra.mxu1 %v2069_v36  ;;  %v910_v36 = vld [vmem:[#allocation3 + $0x2] sm:$0x1] }
 0x32d   : > { %1774 = vmatprep.subr.bf16.mxu0 %v2070_v45  ;;  %1872 = vmatprep.subr.bf16.mxu1 %v2070_v45 }
 0x330   : > { %1775 = vmatpush3.bf16.msra.mxu0 %v2070_v45  ;;  %1880 = vmatpush3.bf16.msra.mxu1 %v2070_v45 }
 0x331   : > { %1776 = vmatprep.subr.bf16.mxu0 %v2071_v50  ;;  %1873 = vmatprep.subr.bf16.mxu1 %v2071_v50 }
 0x334   : > { %1777 = vmatpush3.bf16.msra.mxu0 %v2071_v50  ;;  %1881 = vmatpush3.bf16.msra.mxu1 %v2071_v50 }
 0x337   : > { %1779 = vmatmul.mubr.bf16.vlgmr.msra.gmra.mrb[0].mxu0 %v777_v55  ;;  %1783 = vmatmul.mubr.bf16.vlgmr.msra.gmra.mrb[0].mxu1 %v779_v56 }
 0x40a   : > { %v1780_v57 = vpop.f32.mrb[0].mxu0  ;;  %v1784_v58 = vpop.f32.mrb[0].mxu1 }
 0x40b   : > { %v879_v59 = vpop.f32.mrb[1].mxu0  ;;  %v895_v60 = vpop.f32.mrb[1].mxu1  ;;  %v929_v8 = vmul.f32 %v1780_v57, %v1780_v57  ;;  %v933_v20 = vmul.f32 %v1784_v58, %v1784_v58 }
 0x40c   : > { %v1781_v61 = vpop.f32.mrb[2].mxu0  ;;  %v1785_v62 = vpop.f32.mrb[2].mxu1  ;;  %v927_v3 = vmul.f32 %v879_v59, %v879_v59  ;;  %v931_v14 = vmul.f32 %v895_v60, %v895_v60 }
 0x40d   : > { %v951_v63 = vpack.c.bf16 %v1781_v61, %v1780_v57  ;;  %v882_v0 = vpop.f32.mrb[3].mxu0  ;;  %v953_v1 = vpack.c.bf16 %v1785_v62, %v1784_v58  ;;  %v898_v2 = vpop.f32.mrb[3].mxu1  ;;  %v930_v11 = vmul.f32 %v1781_v61, %v1781_v61  ;;  %v934_v23 = vmul.f32 %v1785_v62, %v1785_v62 }
 0x40e   : > { %v911_v4 = vadd.f32 %v882_v0, %v879_v59  ;;  %v928_v5 = vmul.f32 %v882_v0, %v882_v0  ;;  %v950_v6 = vpack.c.bf16 %v882_v0, %v879_v59  ;;  %v952_v7 = vpack.c.bf16 %v898_v2, %v895_v60 }
 0x40f   : > { %955 = vst [vmem:[%s2607_s23 + $0x8] sm:$0xff] %v951_v63  ;;  %957 = vst [vmem:[%s2607_s23 + $0x18] sm:$0xff] %v953_v1  ;;  %v932_v19 = vmul.f32 %v898_v2, %v898_v2 }
 0x410   : > { %v912_v9 = vadd.f32 %v1780_v57, %v911_v4  ;;  %v935_v10 = vadd.f32 %v928_v5, %v927_v3  ;;  %954 = vst [vmem:[%s2607_s23] sm:$0xff] %v950_v6  ;;  %956 = vst [vmem:[%s2607_s23 + $0x10] sm:$0xff] %v952_v7 }
 0x412   : > { %v936_v12 = vadd.f32 %v935_v10, %v929_v8  ;;  %v913_v13 = vadd.f32 %v1781_v61, %v912_v9 }
 0x414   : > { %v914_v15 = vadd.f32 %v913_v13, %v895_v60  ;;  %v937_v16 = vadd.f32 %v936_v12, %v930_v11 }
 0x416   : > { %v938_v17 = vadd.f32 %v937_v16, %v931_v14  ;;  %v915_v18 = vadd.f32 %v914_v15, %v898_v2 }
 0x418   : > { %v916_v21 = vadd.f32 %v1784_v58, %v915_v18  ;;  %v939_v22 = vadd.f32 %v938_v17, %v932_v19 }
 0x41a   : > { %v917_v24 = vadd.f32 %v1785_v62, %v916_v21  ;;  %v940_v25 = vadd.f32 %v939_v22, %v933_v20 }
 0x41c   : > { %v918_v26 = vrot.slane %v917_v24, 4  ;;  %v941_v27 = vadd.f32 %v940_v25, %v934_v23 }
 0x41e   : > { %v919_v28 = vadd.f32 %v918_v26, %v917_v24  ;;  %v942_v29 = vrot.slane %v941_v27, 4 }
 0x420   : > { %v920_v30 = vrot.slane %v919_v28, 2  ;;  %v943_v31 = vadd.f32 %v942_v29, %v941_v27 }
 0x422   : > { %v921_v32 = vadd.f32 %v920_v30, %v919_v28  ;;  %v944_v33 = vrot.slane %v943_v31, 2 }
 0x424   : > { %v922_v34 = vrot.slane %v921_v32, 1  ;;  %v945_v35 = vadd.f32 %v944_v33, %v943_v31 }
 0x426   : > { %v923_v37 = vadd.f32 %v922_v34, %v921_v32  ;;  %v946_v38 = vrot.slane %v945_v35, 1 }
 0x428   : > { %v924_v40 = vadd.f32 %v923_v37, %v910_v36  ;;  %v947_v41 = vadd.f32 %v946_v38, %v945_v35 }
 0x42a   : > { %925 = vst [vmem:[#allocation3 + $0x2] sm:$0x1] %v924_v40  ;;  %v948_v42 = vadd.f32 %v947_v41, %v926_v39 }
 0x42c   : > { %949 = vst [vmem:[#allocation4 + $0x2] sm:$0x1] %v948_v42 }
 0x42d PF: > { %p1613_p0 = scmp.ne.s32.totalorder %s2292_s19, 3 }
 0x42e   : > { %p1614_p3 = scmp.ne.s32.totalorder (!%p1613_p0), %s2288_s18, 0 }
 0x42f   : > { %961 = sbr.rel (%p1613_p0) target bundleno = 1386 (0x56a), region = 72 }
 0x436   : > { %964 = sbr.rel (%p1614_p3) target bundleno = 1107 (0x453), region = 76  ;;  %v965_v43 = vld [vmem:[#allocation3 + $0x2] sm:$0x1] (!%p1614_p3)  ;;  %v967_v44 = vld [vmem:[#allocation4 + $0x2] sm:$0x1] (!%p1614_p3) }
 0x437   : > { %v966_v45 = vmul.f32 (!%p1614_p3), 0.00390625, %v965_v43  ;;  %v968_v46 = vmul.f32 (!%p1614_p3), 0.00390625, %v967_v44  ;;  %v972_v51 = vld [vmem:[#allocation11 + $0x4] sm:$0x1] (!%p1614_p3)  ;;  %v977_v54 = vld [vmem:[#allocation11 + $0x5] sm:$0x1] (!%p1614_p3) }
 0x439   : > { %v969_v47 = vmul.f32 (!%p1614_p3), %v966_v45, %v966_v45 }
 0x43b   : > { %v970_v48 = vsub.f32 (!%p1614_p3), %v968_v46, %v969_v47 }
 0x43d   : > { %v971_v49 = vmax.f32 %v970_v48, 0.0 }
 0x43f   : > { %v973_v50 = vadd.f32 1e-05, %v971_v49 }
 0x441   : > { %2072 = vrsqrt.f32 %v973_v50 }
 0x44b   : > { %v2073_v52 = vpop.eup %2072 }
 0x44c   : > { %v975_v53 = vmul.f32 %v2073_v52, %v972_v51 }
 0x44e   : > { %976 = vst [vmem:[#allocation5] sm:$0x1] %v975_v53  ;;  %v978_v55 = vmul.f32 %v975_v53, %v966_v45 }
 0x450   : > { %v979_v56 = vsub.f32 %v977_v54, %v978_v55 }
 0x452   : > { %980 = vst [vmem:[#allocation5 + $0x1] sm:$0x1] %v979_v56 }
 0x453 PF: > { %v2074_v57 = vld [vmem:[#allocation9 + $0xc0] sm:$0xff]   ;;  %v2075_v58 = vld [vmem:[#allocation9 + $0xc8] sm:$0xff]   ;;  %s1651_s7 = sshll.u32 %s2288_s18, 5  ;;  %v2076_v59 = vld [vmem:[#allocation9 + $0xd0] sm:$0xff]  }
 0x454   : > { %1786 = vmatprep.subr.bf16.mxu0 %v2074_v57  ;;  %1882 = vmatprep.subr.bf16.mxu1 %v2074_v57  ;;  %v2077_v60 = vld [vmem:[#allocation9 + $0xd8] sm:$0xff]   ;;  %s2620_s29 = scalar_lea.vmem [#allocation2], %s1651_s7  ;;  %v2078_v9 = vld [vmem:[#allocation9 + $0xe0] sm:$0xff]   ;;  %v2079_v22 = vld [vmem:[#allocation9 + $0xe8] sm:$0xff]  }
 0x455   : > { %1787 = vmatpush3.bf16.msra.mxu0 %v2074_v57  ;;  %1890 = vmatpush3.bf16.msra.mxu1 %v2074_v57  ;;  %v984_v61 = vld [vmem:[%s2620_s29] sm:$0xff]  ;;  %v1617_v62 = vld [vmem:[#allocation5] ss:$0 sm:$0xff]  ;;  %v986_v1 = vld [vmem:[%s2620_s29 + $0x10] sm:$0xff] }
 0x456   : > { %1788 = vmatprep.subr.bf16.mxu0 %v2075_v58  ;;  %1883 = vmatprep.subr.bf16.mxu1 %v2075_v58  ;;  %v988_v63 = vunpack.c.l.bf16 %v984_v61  ;;  %v989_v0 = vunpack.c.h.bf16 %v984_v61  ;;  %v985_v3 = vld [vmem:[%s2620_s29 + $0x8] sm:$0xff]  ;;  %v992_v4 = vunpack.c.l.bf16 %v986_v1  ;;  %v993_v5 = vunpack.c.h.bf16 %v986_v1  ;;  %v987_v8 = vld [vmem:[%s2620_s29 + $0x18] sm:$0xff] }
 0x457   : > { %v990_v13 = vunpack.c.l.bf16 %v985_v3  ;;  %v991_v15 = vunpack.c.h.bf16 %v985_v3  ;;  %v994_v17 = vunpack.c.l.bf16 %v987_v8  ;;  %v995_v18 = vunpack.c.h.bf16 %v987_v8  ;;  %v2080_v31 = vld [vmem:[#allocation9 + $0xf0] sm:$0xff]   ;;  %v2081_v36 = vld [vmem:[#allocation9 + $0xf8] sm:$0xff]  }
 0x458   : > { %v1001_v6 = vmul.f32 %v1617_v62, %v988_v63  ;;  %v1002_v7 = vmul.f32 %v1617_v62, %v989_v0  ;;  %v1005_v10 = vmul.f32 %v1617_v62, %v992_v4  ;;  %v1006_v14 = vmul.f32 %v1617_v62, %v993_v5 }
 0x459   : > { %1789 = vmatpush3.bf16.msra.mxu0 %v2075_v58  ;;  %1891 = vmatpush3.bf16.msra.mxu1 %v2075_v58  ;;  %v1618_v2 = vld [vmem:[#allocation5 + $0x1] ss:$0 sm:$0xff]  ;;  %v1003_v26 = vmul.f32 %v1617_v62, %v990_v13  ;;  %v1004_v27 = vmul.f32 %v1617_v62, %v991_v15  ;;  %v1007_v28 = vmul.f32 %v1617_v62, %v994_v17 }
 0x45a   : > { %1790 = vmatprep.subr.bf16.mxu0 %v2076_v59  ;;  %1884 = vmatprep.subr.bf16.mxu1 %v2076_v59  ;;  %v1014_v11 = vadd.f32 %v1618_v2, %v1001_v6  ;;  %v1015_v12 = vadd.f32 %v1618_v2, %v1002_v7  ;;  %v1018_v16 = vadd.f32 %v1618_v2, %v1005_v10 }
 0x45b   : > { %v1019_v21 = vadd.f32 %v1618_v2, %v1006_v14  ;;  %v1008_v29 = vmul.f32 %v1617_v62, %v995_v18  ;;  %v1016_v32 = vadd.f32 %v1618_v2, %v1003_v26  ;;  %v1017_v33 = vadd.f32 %v1618_v2, %v1004_v27 }
 0x45c   : > { %v1022_v19 = vmax.f32 %v1014_v11, 0.0  ;;  %v1023_v20 = vmax.f32 %v1015_v12, 0.0  ;;  %v1026_v23 = vmax.f32 %v1018_v16, 0.0  ;;  %v1020_v34 = vadd.f32 %v1618_v2, %v1007_v28 }
 0x45d   : > { %1791 = vmatpush3.bf16.msra.mxu0 %v2076_v59  ;;  %1892 = vmatpush3.bf16.msra.mxu1 %v2076_v59  ;;  %v1027_v25 = vmax.f32 %v1019_v21, 0.0  ;;  %v1021_v35 = vadd.f32 %v1618_v2, %v1008_v29  ;;  %v1024_v37 = vmax.f32 %v1016_v32, 0.0  ;;  %v1025_v38 = vmax.f32 %v1017_v33, 0.0 }
 0x45e   : > { %1792 = vmatprep.subr.bf16.mxu0 %v2077_v60  ;;  %1885 = vmatprep.subr.bf16.mxu1 %v2077_v60  ;;  %v1030_v24 = vpack.c.bf16 %v1023_v20, %v1022_v19  ;;  %v1028_v39 = vmax.f32 %v1020_v34, 0.0 }
 0x45f   : > { %v1032_v30 = vpack.c.bf16 %v1027_v25, %v1026_v23  ;;  %v1029_v40 = vmax.f32 %v1021_v35, 0.0  ;;  %v1031_v41 = vpack.c.bf16 %v1025_v38, %v1024_v37  ;;  %v1180_v25 = vld [vmem:[#allocation4 + $0x3] sm:$0x1] }
 0x460   : > { %1802 = vmatprep.mubr.bf16.mxu0 %v1030_v24 }
 0x461   : > { %1793 = vmatpush3.bf16.msra.mxu0 %v2077_v60  ;;  %1893 = vmatpush3.bf16.msra.mxu1 %v2077_v60  ;;  %v1033_v42 = vpack.c.bf16 %v1029_v40, %v1028_v39 }
 0x462   : > { %1794 = vmatprep.subr.bf16.mxu0 %v2078_v9  ;;  %1886 = vmatprep.subr.bf16.mxu1 %v2078_v9 }
 0x463   : > { %1806 = vmatprep.mubr.bf16.mxu1 %v1032_v30 }
 0x465   : > { %1795 = vmatpush3.bf16.msra.mxu0 %v2078_v9  ;;  %1894 = vmatpush3.bf16.msra.mxu1 %v2078_v9 }
 0x466   : > { %1796 = vmatprep.subr.bf16.mxu0 %v2079_v22  ;;  %1887 = vmatprep.subr.bf16.mxu1 %v2079_v22 }
 0x469   : > { %1797 = vmatpush3.bf16.msra.mxu0 %v2079_v22  ;;  %1895 = vmatpush3.bf16.msra.mxu1 %v2079_v22  ;;  %v1164_v22 = vld [vmem:[#allocation3 + $0x3] sm:$0x1] }
 0x46a   : > { %1798 = vmatprep.subr.bf16.mxu0 %v2080_v31  ;;  %1888 = vmatprep.subr.bf16.mxu1 %v2080_v31 }
 0x46d   : > { %1799 = vmatpush3.bf16.msra.mxu0 %v2080_v31  ;;  %1896 = vmatpush3.bf16.msra.mxu1 %v2080_v31 }
 0x46e   : > { %1800 = vmatprep.subr.bf16.mxu0 %v2081_v36  ;;  %1889 = vmatprep.subr.bf16.mxu1 %v2081_v36 }
 0x471   : > { %1801 = vmatpush3.bf16.msra.mxu0 %v2081_v36  ;;  %1897 = vmatpush3.bf16.msra.mxu1 %v2081_v36 }
 0x474   : > { %1803 = vmatmul.mubr.bf16.vlgmr.msra.gmra.mrb[0].mxu0 %v1031_v41  ;;  %1807 = vmatmul.mubr.bf16.vlgmr.msra.gmra.mrb[0].mxu1 %v1033_v42 }
 0x547   : > { %v1804_v43 = vpop.f32.mrb[0].mxu0  ;;  %v1808_v44 = vpop.f32.mrb[0].mxu1 }
 0x548   : > { %v1133_v45 = vpop.f32.mrb[1].mxu0  ;;  %v1149_v46 = vpop.f32.mrb[1].mxu1  ;;  %v1183_v58 = vmul.f32 %v1804_v43, %v1804_v43  ;;  %v1187_v6 = vmul.f32 %v1808_v44, %v1808_v44 }
 0x549   : > { %v1805_v47 = vpop.f32.mrb[2].mxu0  ;;  %v1809_v48 = vpop.f32.mrb[2].mxu1  ;;  %v1181_v53 = vmul.f32 %v1133_v45, %v1133_v45  ;;  %v1185_v0 = vmul.f32 %v1149_v46, %v1149_v46 }
 0x54a   : > { %v1205_v49 = vpack.c.bf16 %v1805_v47, %v1804_v43  ;;  %v1136_v50 = vpop.f32.mrb[3].mxu0  ;;  %v1207_v51 = vpack.c.bf16 %v1809_v48, %v1808_v44  ;;  %v1152_v52 = vpop.f32.mrb[3].mxu1  ;;  %v1184_v61 = vmul.f32 %v1805_v47, %v1805_v47  ;;  %v1188_v9 = vmul.f32 %v1809_v48, %v1809_v48 }
 0x54b   : > { %v1165_v54 = vadd.f32 %v1136_v50, %v1133_v45  ;;  %v1182_v55 = vmul.f32 %v1136_v50, %v1136_v50  ;;  %v1204_v56 = vpack.c.bf16 %v1136_v50, %v1133_v45  ;;  %v1206_v57 = vpack.c.bf16 %v1152_v52, %v1149_v46 }
 0x54c   : > { %1209 = vst [vmem:[%s2620_s29 + $0x8] sm:$0xff] %v1205_v49  ;;  %1211 = vst [vmem:[%s2620_s29 + $0x18] sm:$0xff] %v1207_v51  ;;  %v1186_v5 = vmul.f32 %v1152_v52, %v1152_v52 }
 0x54d   : > { %v1166_v59 = vadd.f32 %v1804_v43, %v1165_v54  ;;  %v1189_v60 = vadd.f32 %v1182_v55, %v1181_v53  ;;  %1208 = vst [vmem:[%s2620_s29] sm:$0xff] %v1204_v56  ;;  %1210 = vst [vmem:[%s2620_s29 + $0x10] sm:$0xff] %v1206_v57 }
 0x54f   : > { %v1190_v62 = vadd.f32 %v1189_v60, %v1183_v58  ;;  %v1167_v63 = vadd.f32 %v1805_v47, %v1166_v59 }
 0x551   : > { %v1168_v1 = vadd.f32 %v1167_v63, %v1149_v46  ;;  %v1191_v2 = vadd.f32 %v1190_v62, %v1184_v61 }
 0x553   : > { %v1192_v3 = vadd.f32 %v1191_v2, %v1185_v0  ;;  %v1169_v4 = vadd.f32 %v1168_v1, %v1152_v52 }
 0x555   : > { %v1170_v7 = vadd.f32 %v1808_v44, %v1169_v4  ;;  %v1193_v8 = vadd.f32 %v1192_v3, %v1186_v5 }
 0x557   : > { %v1171_v10 = vadd.f32 %v1809_v48, %v1170_v7  ;;  %v1194_v11 = vadd.f32 %v1193_v8, %v1187_v6 }
 0x559   : > { %v1172_v12 = vrot.slane %v1171_v10, 4  ;;  %v1195_v13 = vadd.f32 %v1194_v11, %v1188_v9 }
 0x55b   : > { %v1173_v14 = vadd.f32 %v1172_v12, %v1171_v10  ;;  %v1196_v15 = vrot.slane %v1195_v13, 4 }
 0x55d   : > { %v1174_v16 = vrot.slane %v1173_v14, 2  ;;  %v1197_v17 = vadd.f32 %v1196_v15, %v1195_v13 }
 0x55f   : > { %v1175_v18 = vadd.f32 %v1174_v16, %v1173_v14  ;;  %v1198_v19 = vrot.slane %v1197_v17, 2 }
 0x561   : > { %v1176_v20 = vrot.slane %v1175_v18, 1  ;;  %v1199_v21 = vadd.f32 %v1198_v19, %v1197_v17 }
 0x563   : > { %v1177_v23 = vadd.f32 %v1176_v20, %v1175_v18  ;;  %v1200_v24 = vrot.slane %v1199_v21, 1 }
 0x565   : > { %v1178_v26 = vadd.f32 %v1177_v23, %v1164_v22  ;;  %v1201_v27 = vadd.f32 %v1200_v24, %v1199_v21 }
 0x567   : > { %1179 = vst [vmem:[#allocation3 + $0x3] sm:$0x1] %v1178_v26  ;;  %v1202_v28 = vadd.f32 %v1201_v27, %v1180_v25 }
 0x569   : > { %1203 = vst [vmem:[#allocation4 + $0x3] sm:$0x1] %v1202_v28 }
 0x56a PF: > { %p1627_p7 = scmp.ne.s32.totalorder %s2292_s19, 4 }
 0x56b   : > { %p1628_p2 = scmp.ne.s32.totalorder (!%p1627_p7), %s2288_s18, 0 }
 0x56c   : > { %1215 = sbr.rel (%p1627_p7) target bundleno = 1675 (0x68b), region = 80 }
 0x573   : > { %1218 = sbr.rel (%p1628_p2) target bundleno = 1424 (0x590), region = 84  ;;  %v1219_v29 = vld [vmem:[#allocation3 + $0x3] sm:$0x1] (!%p1628_p2)  ;;  %v1221_v30 = vld [vmem:[#allocation4 + $0x3] sm:$0x1] (!%p1628_p2) }
 0x574   : > { %v1220_v31 = vmul.f32 (!%p1628_p2), 0.00390625, %v1219_v29  ;;  %v1222_v32 = vmul.f32 (!%p1628_p2), 0.00390625, %v1221_v30  ;;  %v1226_v37 = vld [vmem:[#allocation11 + $0x6] sm:$0x1] (!%p1628_p2)  ;;  %v1231_v40 = vld [vmem:[#allocation11 + $0x7] sm:$0x1] (!%p1628_p2) }
 0x576   : > { %v1223_v33 = vmul.f32 (!%p1628_p2), %v1220_v31, %v1220_v31 }
 0x578   : > { %v1224_v34 = vsub.f32 (!%p1628_p2), %v1222_v32, %v1223_v33 }
 0x57a   : > { %v1225_v35 = vmax.f32 %v1224_v34, 0.0 }
 0x57c   : > { %v1227_v36 = vadd.f32 1e-05, %v1225_v35 }
 0x57e   : > { %2082 = vrsqrt.f32 %v1227_v36 }
 0x588   : > { %v2083_v38 = vpop.eup %2082 }
 0x589   : > { %v1229_v39 = vmul.f32 %v2083_v38, %v1226_v37 }
 0x58b   : > { %1230 = vst [vmem:[#allocation5] sm:$0x1] %v1229_v39  ;;  %v1232_v41 = vmul.f32 %v1229_v39, %v1220_v31 }
 0x58d   : > { %v1233_v42 = vsub.f32 %v1231_v40, %v1232_v41 }
 0x58f   : > { %1234 = vst [vmem:[#allocation5 + $0x1] sm:$0x1] %v1233_v42 }
 0x590 PF: > { %v2084_v43 = vld [vmem:[#allocation9 + $0x100] sm:$0xff]   ;;  %v2085_v44 = vld [vmem:[#allocation9 + $0x108] sm:$0xff]   ;;  %s1652_s9 = sshll.u32 %s2288_s18, 5  ;;  %v2086_v45 = vld [vmem:[#allocation9 + $0x110] sm:$0xff]  }
 0x591   : > { %1810 = vmatprep.subr.bf16.mxu0 %v2084_v43  ;;  %1898 = vmatprep.subr.bf16.mxu1 %v2084_v43  ;;  %v2087_v46 = vld [vmem:[#allocation9 + $0x118] sm:$0xff]   ;;  %s1237_s4 = scalar_lea.vmem [#allocation2], %s1652_s9  ;;  %v2088_v59 = vld [vmem:[#allocation9 + $0x120] sm:$0xff]   ;;  %v2089_v8 = vld [vmem:[#allocation9 + $0x128] sm:$0xff]  }
 0x592   : > { %1811 = vmatpush3.bf16.msra.mxu0 %v2084_v43  ;;  %1906 = vmatpush3.bf16.msra.mxu1 %v2084_v43  ;;  %v1238_v47 = vld [vmem:[%s1237_s4] sm:$0xff]  ;;  %v1631_v48 = vld [vmem:[#allocation5] ss:$0 sm:$0xff]  ;;  %v1240_v51 = vld [vmem:[%s1237_s4 + $0x10] sm:$0xff] }
 0x593   : > { %1812 = vmatprep.subr.bf16.mxu0 %v2085_v44  ;;  %1899 = vmatprep.subr.bf16.mxu1 %v2085_v44  ;;  %v1242_v49 = vunpack.c.l.bf16 %v1238_v47  ;;  %v1243_v50 = vunpack.c.h.bf16 %v1238_v47  ;;  %v1246_v53 = vunpack.c.l.bf16 %v1240_v51  ;;  %v1247_v54 = vunpack.c.h.bf16 %v1240_v51  ;;  %v1239_v55 = vld [vmem:[%s1237_s4 + $0x8] sm:$0xff]  ;;  %v1241_v58 = vld [vmem:[%s1237_s4 + $0x18] sm:$0xff]  ;;  %v1633_v29 = vld [vmem:[#allocation11 + $0x8] ss:$0 sm:$0xff] }
 0x594   : > { %v1244_v0 = vunpack.c.l.bf16 %v1239_v55  ;;  %v1245_v1 = vunpack.c.h.bf16 %v1239_v55  ;;  %v1248_v4 = vunpack.c.l.bf16 %v1241_v58  ;;  %v1249_v5 = vunpack.c.h.bf16 %v1241_v58  ;;  %v2090_v17 = vld [vmem:[#allocation9 + $0x130] sm:$0xff]   ;;  %v2091_v22 = vld [vmem:[#allocation9 + $0x138] sm:$0xff]  }
 0x595   : > { %v1255_v56 = vmul.f32 %v1631_v48, %v1242_v49  ;;  %v1256_v57 = vmul.f32 %v1631_v48, %v1243_v50  ;;  %v1259_v60 = vmul.f32 %v1631_v48, %v1246_v53  ;;  %v1260_v61 = vmul.f32 %v1631_v48, %v1247_v54 }
 0x596   : > { %1813 = vmatpush3.bf16.msra.mxu0 %v2085_v44  ;;  %1907 = vmatpush3.bf16.msra.mxu1 %v2085_v44  ;;  %v1632_v52 = vld [vmem:[#allocation5 + $0x1] ss:$0 sm:$0xff]  ;;  %v1257_v12 = vmul.f32 %v1631_v48, %v1244_v0  ;;  %v1258_v14 = vmul.f32 %v1631_v48, %v1245_v1  ;;  %v1261_v15 = vmul.f32 %v1631_v48, %v1248_v4 }
 0x597   : > { %1814 = vmatprep.subr.bf16.mxu0 %v2086_v45  ;;  %1900 = vmatprep.subr.bf16.mxu1 %v2086_v45  ;;  %v1268_v62 = vadd.f32 %v1632_v52, %v1255_v56  ;;  %v1269_v63 = vadd.f32 %v1632_v52, %v1256_v57  ;;  %v1272_v2 = vadd.f32 %v1632_v52, %v1259_v60 }
 0x598   : > { %v1273_v3 = vadd.f32 %v1632_v52, %v1260_v61  ;;  %v1262_v16 = vmul.f32 %v1631_v48, %v1249_v5  ;;  %v1270_v18 = vadd.f32 %v1632_v52, %v1257_v12  ;;  %v1271_v19 = vadd.f32 %v1632_v52, %v1258_v14 }
 0x599   : > { %v1276_v6 = vmax.f32 %v1268_v62, 0.0  ;;  %v1277_v7 = vmax.f32 %v1269_v63, 0.0  ;;  %v1280_v9 = vmax.f32 %v1272_v2, 0.0  ;;  %v1274_v20 = vadd.f32 %v1632_v52, %v1261_v15 }
 0x59a   : > { %1815 = vmatpush3.bf16.msra.mxu0 %v2086_v45  ;;  %1908 = vmatpush3.bf16.msra.mxu1 %v2086_v45  ;;  %v1281_v10 = vmax.f32 %v1273_v3, 0.0  ;;  %v1275_v21 = vadd.f32 %v1632_v52, %v1262_v16  ;;  %v1278_v23 = vmax.f32 %v1270_v18, 0.0  ;;  %v1279_v24 = vmax.f32 %v1271_v19, 0.0 }
 0x59b   : > { %1816 = vmatprep.subr.bf16.mxu0 %v2087_v46  ;;  %1901 = vmatprep.subr.bf16.mxu1 %v2087_v46  ;;  %v1284_v11 = vpack.c.bf16 %v1277_v7, %v1276_v6  ;;  %v1282_v25 = vmax.f32 %v1274_v20, 0.0 }
 0x59c   : > { %v1286_v13 = vpack.c.bf16 %v1281_v10, %v1280_v9  ;;  %v1283_v26 = vmax.f32 %v1275_v21, 0.0  ;;  %v1285_v27 = vpack.c.bf16 %v1279_v24, %v1278_v23 }
 0x59d   : > { %1826 = vmatprep.mubr.bf16.mxu0 %v1284_v11 }
 0x59e   : > { %1817 = vmatpush3.bf16.msra.mxu0 %v2087_v46  ;;  %1909 = vmatpush3.bf16.msra.mxu1 %v2087_v46  ;;  %v1287_v28 = vpack.c.bf16 %v1283_v26, %v1282_v25 }
 0x59f   : > { %1818 = vmatprep.subr.bf16.mxu0 %v2088_v59  ;;  %1902 = vmatprep.subr.bf16.mxu1 %v2088_v59 }
 0x5a0   : > { %1830 = vmatprep.mubr.bf16.mxu1 %v1286_v13 }
 0x5a2   : > { %1819 = vmatpush3.bf16.msra.mxu0 %v2088_v59  ;;  %1910 = vmatpush3.bf16.msra.mxu1 %v2088_v59 }
 0x5a3   : > { %1820 = vmatprep.subr.bf16.mxu0 %v2089_v8  ;;  %1903 = vmatprep.subr.bf16.mxu1 %v2089_v8 }
 0x5a6   : > { %1821 = vmatpush3.bf16.msra.mxu0 %v2089_v8  ;;  %1911 = vmatpush3.bf16.msra.mxu1 %v2089_v8 }
 0x5a7   : > { %1822 = vmatprep.subr.bf16.mxu0 %v2090_v17  ;;  %1904 = vmatprep.subr.bf16.mxu1 %v2090_v17 }
 0x5aa   : > { %1823 = vmatpush3.bf16.msra.mxu0 %v2090_v17  ;;  %1912 = vmatpush3.bf16.msra.mxu1 %v2090_v17 }
 0x5ab   : > { %1824 = vmatprep.subr.bf16.mxu0 %v2091_v22  ;;  %1905 = vmatprep.subr.bf16.mxu1 %v2091_v22 }
 0x5ae   : > { %1825 = vmatpush3.bf16.msra.mxu0 %v2091_v22  ;;  %1913 = vmatpush3.bf16.msra.mxu1 %v2091_v22 }
 0x5b1   : > { %1827 = vmatmul.mubr.bf16.vlgmr.msra.gmra.mrb[0].mxu0 %v1285_v27  ;;  %1831 = vmatmul.mubr.bf16.vlgmr.msra.gmra.mrb[0].mxu1 %v1287_v28 }
 0x684   : > { %v1828_v30 = vpop.f32.mrb[0].mxu0  ;;  %v1832_v31 = vpop.f32.mrb[0].mxu1 }
 0x685   : > { %v1401_v32 = vadd.f32 %v1828_v30, %v1633_v29  ;;  %v1417_v33 = vadd.f32 %v1832_v31, %v1633_v29  ;;  %v1392_v34 = vpop.f32.mrb[1].mxu0  ;;  %v1408_v35 = vpop.f32.mrb[1].mxu1 }
 0x686   : > { %v1393_v36 = vadd.f32 %v1633_v29, %v1392_v34  ;;  %v1409_v37 = vadd.f32 %v1633_v29, %v1408_v35  ;;  %v1829_v38 = vpop.f32.mrb[2].mxu0  ;;  %v1833_v39 = vpop.f32.mrb[2].mxu1 }
 0x687   : > { %1425 = vst [vmem:[%s2579_s5 + $0x10] sm:$0xff] %v1401_v32  ;;  %1429 = vst [vmem:[%s2579_s5 + $0x30] sm:$0xff] %v1417_v33  ;;  %v1404_v40 = vadd.f32 %v1829_v38, %v1633_v29  ;;  %v1420_v41 = vadd.f32 %v1833_v39, %v1633_v29  ;;  %v1395_v42 = vpop.f32.mrb[3].mxu0  ;;  %v1411_v43 = vpop.f32.mrb[3].mxu1 }
 0x688   : > { %1423 = vst [vmem:[%s2579_s5] sm:$0xff] %v1393_v36  ;;  %1427 = vst [vmem:[%s2579_s5 + $0x20] sm:$0xff] %v1409_v37  ;;  %v1396_v44 = vadd.f32 %v1633_v29, %v1395_v42  ;;  %v1412_v45 = vadd.f32 %v1633_v29, %v1411_v43 }
 0x689   : > { %1426 = vst [vmem:[%s2579_s5 + $0x18] sm:$0xff] %v1404_v40  ;;  %1430 = vst [vmem:[%s2579_s5 + $0x38] sm:$0xff] %v1420_v41 }
 0x68a   : > { %1424 = vst [vmem:[%s2579_s5 + $0x8] sm:$0xff] %v1396_v44  ;;  %1428 = vst [vmem:[%s2579_s5 + $0x28] sm:$0xff] %v1412_v45 }
 0x68b PF: > { %p1439_p1 = scmp.eq.s32.totalorder %s2292_s19, 4  ;;  %s1447_s2 = sshll.u32 %s2579_s5, 4  ;;  %s2644_s2 = int_to_ptr.vmem [resolvable:$true] %s1447_s2 }
 0x68c   : > { %s2753_s8 = sld [smem:[#allocation22_spill]]  ;;  %s2653_s25 = scalar_lea.sflag [#allocation8], %s237_s30 }
 0x68d   : > { %s2776_s18 = smov (!%p1439_p1, %s2288_s18), 0  ;;  %s2178_s27 = scalar_lea.vmem %s2644_s2, 1024 }
 0x68e   : > { %s1653_s3 = sshll.u32 %s2776_s18, 10  ;;  %p2179_p9 = scmp.ne.s32.totalorder %s2644_s2, %s2178_s27 }
 0x68f   : > { %p2754_p10 = scmp.ne.s32.totalorder %s2737_s28, 0  ;;  %s2314_s19 = smov [#allocation12]  }
 0x690   : > { %s2182_s5 = sshll.u32 %s2314_s19, 4  ;;  %s2183_s5 = int_to_ptr.vmem [resolvable:$false] %s2182_s5 }
 0x691   : > { %p2180_p13 = pnand %p2179_p9, %p2754_p10  ;;  %s2184_s15 = scalar_lea.vmem %s2183_s5, 2048 }
 0x692   : > { %s2649_s11 = scalar_lea.hbm %s2753_s8, %s1653_s3  ;;  %p2185_p4 = scmp.lt.s32.totalorder %s2644_s2, %s2183_s5 }
 0x693   : > { %p2181_p11 = pneg %p2180_p13  ;;  %p2186_p5 = scmp.lt.s32.totalorder %s2184_s15, %s2178_s27 }
 0x695   : > { %p2187_p6 = por %p2186_p5, %p2185_p4 }
 0x697   : > { %p2188_p8 = pnand %p2187_p6, %p2181_p11 }
 0x699   : > { %2191 = shalt.err (!%p2188_p8)
}
 0x69a   : > { %s2192_s18 = scalar_lea.hbm %s2649_s11, 1024  ;;  %s2196_s24 = scalar_lea.hbm %s2753_s8, 4096 }
 0x69b   : > { %p2193_p12 = scmp.ne.s32.totalorder %s2649_s11, %s2192_s18  ;;  %p2197_p7 = scmp.lt.u32.totalorder %s2649_s11, %s2753_s8 }
 0x69c   : > { %p2198_p2 = scmp.lt.u32.totalorder %s2196_s24, %s2192_s18  ;;  %p2200_p9 = scmp.lt.u32.totalorder %s2192_s18, %s2649_s11 }
 0x69d   : > { %p2194_p0 = pnand %p2193_p12, %p2754_p10 }
 0x69e   : > { %p2199_p1 = por %p2198_p2, %p2197_p7 }
 0x69f   : > { %p2195_p3 = pneg %p2194_p0 }
 0x6a0   : > { %p2201_p13 = por %p2200_p9, %p2199_p1 }
 0x6a2   : > { %p2202_p11 = pnand %p2201_p13, %p2195_p3 }
 0x6a4   : > { %2205 = shalt.err (!%p2202_p11)
}
 0x6a5   : > { %s2315_s29 = smov 128   ;;  %s2316_s9 = smov 8  }
 0x6a6   : > { %1924 = dma.vmem_to_hbm [thread:$0]  (%p2754_p10), %s2644_s2, 1024, %s2649_s11, %s2653_s25, %s2315_s29, %s2315_s29, %s2316_s9  }
 0x6a7 PF: > { %s2755_s4 = sld [smem:[#allocation16_spill]]  ;;  %s2756_s3 = sld [smem:[#allocation18_spill]] }
 0x6a8   : > { %p1946_p4 = scmp.ge.s32.totalorder %s2304_s22, 2 }
 0x6ad   : > { %s1462_s21 = sand.u32 1, %s2755_s4   ;;  %p2757_p5 = scmp.ne.s32.totalorder %s2756_s3, 0 }
 0x6ae   : > { %s1463_s6 = scalar_lea.sflag [#allocation8], %s1462_s21 }
 0x6af   : > { %p1938_p6 = pnand %p1946_p4, %p2757_p5 }
 0x6b1   : > { %2259 = dma.done.wait (!%p1938_p6), %s1463_s6, 1024  }
 0x6b2   : > { %2261 = vsyncadd (!%p1938_p6), %s1463_s6, 4294966272  ;;  %s20_s22 = sadd.s32 1, %s2304_s22   ;;  %s2758_s28 = smov %s2508_s12 }
 0x6b3   : > { %p17_p8 = scmp.ge.s32.totalorder %s20_s22, 22   ;;  %s2759_s19 = sld [smem:[#allocation17_spill]] }
 0x6b4   : > { %s2760_s21 = sld [smem:[#allocation19_spill]]  ;;  %s2761_s12 = smov %s2268_s13 }
 0x6b5   : > { %s2762_s13 = smov %s2272_s14  ;;  %s2763_s14 = smov %s2513_s1 }
 0x6b6   : > { %s2764_s15 = smov %s2280_s16  ;;  %s2765_s16 = smov %s2284_s17 }
 0x6b7   : > { %s2766_s17 = smov %s2758_s28  ;;  %s2767_s18 = smov %s2296_s20 }
 0x6b8   : > { %s2768_s20 = smov %s2770_s10  ;;  %19 = sbr.rel (!%p17_p8) target bundleno = 14 (0xe), region = 134 }
 0x6bf   :  { %1468 = vsyncpa [#allocation7], 1 }
 0x6c0   :  { %1470 = vsyncpa [#allocation7 + $0x1], 1 }
 0x6c1   :  { %1471 = vsyncpa [#allocation10], 1 }
 0x6c2   :  { %1472 = vsyncpa [#allocation8], 1 }
 0x6c3   :  { %1474 = vsyncpa [#allocation8 + $0x1], 1 }

</bundles_post_ra>
